<compile_context>
chip_gen: v7x
topology: tpu7x:2x2x1
jax: 0.10.0
libtpu: 0.0.40
codegen_flags: <defaults>
</compile_context>

<pallas_src>
import jax
import jax.numpy as jnp
from jax.experimental import pallas as pl
from jax.experimental.pallas import tpu as pltpu

INPUT_DIM = 27
HIDDEN = 512
OUT_DIM = 256
N_PROJ = 4


def _round_up(n, m):
    return ((n + m - 1) // m) * m


def _select_tiling():
    """Generation-aware (max_batch_tile, vmem_limit_bytes).

    v7x-class (64 MiB VMEM/TC)  -> 1024-row tiles, 48 MiB scoped-VMEM limit.
    v5e/v6e   (128 MiB VMEM)    -> 2048-row tiles, 96 MiB scoped-VMEM limit.
    Falls back to the conservative (v7x) setting if the query fails.
    """
    vmem_bytes = 64 * 1024 * 1024  # conservative default
    try:
        vmem_bytes = int(pltpu.get_tpu_info().vmem_capacity_bytes)
    except Exception:
        pass
    if vmem_bytes <= 96 * 1024 * 1024:
        return 1024, 48 * 1024 * 1024
    return 2048, 96 * 1024 * 1024


def _resident_spec(shape):
    """Constant-index-map BlockSpec for weights: DMA'd once, stays VMEM-resident.

    Buffered(1) drops the (useless, since the block never changes) second
    pipeline buffer to reclaim VMEM; falls back to the default spec if the
    installed JAX does not accept pipeline_mode.
    """
    idx = lambda b: (0,) * len(shape)
    try:
        return pl.BlockSpec(shape, idx, pipeline_mode=pl.Buffered(1))
    except Exception:
        return pl.BlockSpec(shape, idx)


def _tab_encoder_kernel(x_ref, w1_ref, b1_ref, w2_ref, b2_ref, *o_refs):
    # x_ref : (TB, 27)  f32
    # w1_ref: (4, 27, 512)  bf16      b1_ref: (4, 1, 512) f32
    # w2_ref: (4, 512, 256) bf16      b2_ref: (4, 1, 256) f32
    # o_refs: 4 x (TB, 256)
    x = x_ref[...].astype(jnp.bfloat16)                                    # (TB, 27)

    # Static 4-iteration head loop (fully unrolled).  Keeping the hidden
    # activation per-head (512 wide) instead of fused (2048 wide) keeps live
    # VMEM intermediates ~3 KB/row, enabling large TB on v7x's 64 MiB VMEM.
    for p in range(N_PROJ):
        h = jnp.dot(x, w1_ref[p], preferred_element_type=jnp.float32)      # (TB, 512) f32
        h = jnp.maximum(h + b1_ref[p], 0.0).astype(jnp.bfloat16)           # bias+ReLU in f32
        o = jnp.dot(h, w2_ref[p], preferred_element_type=jnp.float32)      # (TB, 256) f32
        o_refs[p][...] = (o + b2_ref[p]).astype(o_refs[p].dtype)


def tab_encoder(x, w1, b1, w2, b2, out_dtype=jnp.float32):
    """x: (B, 27). Per-head stacked weights:
       w1: (4, 27, 512), b1: (4, 512), w2: (4, 512, 256), b2: (4, 256).
       Returns a list of 4 arrays of shape (B, 256) (mirrors the PyTorch forward)."""
    B, F = x.shape
    assert F == INPUT_DIM

    # bf16 MXU operands (accumulation / bias / ReLU stay f32).
    w1b = w1.astype(jnp.bfloat16)                       # (4, 27, 512)
    w2b = w2.astype(jnp.bfloat16)                       # (4, 512, 256)
    # 2-D-per-head biases: b_ref[p] is already (1, N) -> no [None, :] broadcast.
    b1r = b1.reshape(N_PROJ, 1, HIDDEN)
    b2r = b2.reshape(N_PROJ, 1, OUT_DIM)

    max_tb, vmem_limit = _select_tiling()
    # Clamp tb so the grid has >=2 steps whenever possible (lets the
    # "parallel" batch axis shard across both v7x TensorCores).
    half = -(-B // 2)
    tb = min(max_tb, max(8, _round_up(half, 8)))
    Bp = _round_up(B, tb)
    if Bp != B:
        x = jnp.pad(x, ((0, Bp - B), (0, 0)))
    grid = (Bp // tb,)

    out_shapes = tuple(
        jax.ShapeDtypeStruct((Bp, OUT_DIM), out_dtype) for _ in range(N_PROJ)
    )

    outs = pl.pallas_call(
        _tab_encoder_kernel,
        out_shape=out_shapes,
        grid_spec=pltpu.PrefetchScalarGridSpec(
            num_scalar_prefetch=0,
            grid=grid,
            in_specs=[
                pl.BlockSpec((tb, INPUT_DIM), lambda b: (b, 0)),     # x tile (pipelined)
                _resident_spec((N_PROJ, INPUT_DIM, HIDDEN)),         # W1 (resident)
                _resident_spec((N_PROJ, 1, HIDDEN)),                 # b1 (resident)
                _resident_spec((N_PROJ, HIDDEN, OUT_DIM)),           # W2 (resident)
                _resident_spec((N_PROJ, 1, OUT_DIM)),                # b2 (resident)
            ],
            out_specs=tuple(
                pl.BlockSpec((tb, OUT_DIM), lambda b: (b, 0)) for _ in range(N_PROJ)
            ),
        ),
        compiler_params=pltpu.CompilerParams(
            dimension_semantics=("parallel",),   # batch tiles shard across TCs (v7x)
            vmem_limit_bytes=vmem_limit,
        ),
    )(x, w1b, b1r, w2b, b2r)

    if Bp != B:
        outs = tuple(o[:B] for o in outs)
    return list(outs)


def init_params(key):
    """Deterministic synthetic init (shapes match nn.Linear in the module)."""
    k1, k2, k3, k4 = jax.random.split(key, 4)
    lim1 = 1.0 / (INPUT_DIM ** 0.5)
    lim2 = 1.0 / (HIDDEN ** 0.5)
    w1 = jax.random.uniform(k1, (N_PROJ, INPUT_DIM, HIDDEN), jnp.float32, -lim1, lim1)
    b1 = jax.random.uniform(k2, (N_PROJ, HIDDEN), jnp.float32, -lim1, lim1)
    w2 = jax.random.uniform(k3, (N_PROJ, HIDDEN, OUT_DIM), jnp.float32, -lim2, lim2)
    b2 = jax.random.uniform(k4, (N_PROJ, OUT_DIM), jnp.float32, -lim2, lim2)
    return w1, b1, w2, b2


def reference(x, w1, b1, w2, b2):
    """Pure-JAX f32 reference mirroring the PyTorch forward."""
    outs = []
    for p in range(N_PROJ):
        h = jnp.maximum(x @ w1[p] + b1[p], 0.0)
        outs.append(h @ w2[p] + b2[p])
    return outs


if __name__ == "__main__":
    key = jax.random.PRNGKey(0)
    kx, kp = jax.random.split(key)

    B = 12  # small batch, not a multiple of 8 -> exercises padding + 2-step grid
    x = jax.random.normal(kx, (B, INPUT_DIM), jnp.float32)
    w1, b1, w2, b2 = init_params(kp)

    outs = tab_encoder(x, w1, b1, w2, b2)
    outs = [jax.block_until_ready(o) for o in outs]

    refs = reference(x, w1, b1, w2, b2)
    for o, r in zip(outs, refs):
        assert o.shape == (B, OUT_DIM)
        # bf16 MXU inputs (f32 accumulation) -> loosened tolerance vs f32 reference.
        assert jnp.allclose(o, r, atol=5e-2, rtol=5e-2), float(jnp.abs(o - r).max())

    print("KERNEL_OK")
</pallas_src>

<mosaic_0001>
module attributes {stable_mosaic.version = 11 : i64} {
  func.func @_tab_encoder_kernel(%arg0: i32, %arg1: memref<8x27xf32, #tpu.memory_space<vmem>>, %arg2: memref<4x27x512xbf16, #tpu.memory_space<vmem>>, %arg3: memref<4x1x512xf32, #tpu.memory_space<vmem>>, %arg4: memref<4x512x256xbf16, #tpu.memory_space<vmem>>, %arg5: memref<4x1x256xf32, #tpu.memory_space<vmem>>, %arg6: memref<8x256xf32, #tpu.memory_space<vmem>>, %arg7: memref<8x256xf32, #tpu.memory_space<vmem>>, %arg8: memref<8x256xf32, #tpu.memory_space<vmem>>, %arg9: memref<8x256xf32, #tpu.memory_space<vmem>>) attributes {dimension_semantics = [#tpu.dimension_semantics<parallel>], iteration_bounds = array<i64: 2>, scalar_prefetch = 0 : i64, scratch_operands = 0 : i64, tpu.core_type = #tpu.core_type<tc>, window_params = [{transform_indices = @transform_0, window_bounds = array<i64: 8, 27>}, {pipeline_mode = #tpu.pipeline_mode<synchronous>, transform_indices = @transform_1, window_bounds = array<i64: 4, 27, 512>}, {pipeline_mode = #tpu.pipeline_mode<synchronous>, transform_indices = @transform_2, window_bounds = array<i64: 4, 1, 512>}, {pipeline_mode = #tpu.pipeline_mode<synchronous>, transform_indices = @transform_3, window_bounds = array<i64: 4, 512, 256>}, {pipeline_mode = #tpu.pipeline_mode<synchronous>, transform_indices = @transform_4, window_bounds = array<i64: 4, 1, 256>}, {transform_indices = @transform_5, window_bounds = array<i64: 8, 256>}, {transform_indices = @transform_6, window_bounds = array<i64: 8, 256>}, {transform_indices = @transform_7, window_bounds = array<i64: 8, 256>}, {transform_indices = @transform_8, window_bounds = array<i64: 8, 256>}]} {
    %c0 = arith.constant 0 : index
    %c0_0 = arith.constant 0 : index
    %0 = vector.load %arg1[%c0, %c0_0] : memref<8x27xf32, #tpu.memory_space<vmem>>, vector<8x27xf32>
    %1 = arith.truncf %0 : vector<8x27xf32> to vector<8x27xbf16>
    %c0_1 = arith.constant 0 : index
    %c0_2 = arith.constant 0 : index
    %c0_3 = arith.constant 0 : index
    %2 = vector.load %arg2[%c0_1, %c0_2, %c0_3] : memref<4x27x512xbf16, #tpu.memory_space<vmem>>, vector<1x27x512xbf16>
    %3 = vector.shape_cast %2 : vector<1x27x512xbf16> to vector<27x512xbf16>
    %cst = arith.constant dense<0.000000e+00> : vector<8x512xf32>
    %4 = tpu.matmul %1, %3, %cst {dimension_numbers = #tpu.dot_dimension_numbers<[1], [0], [0], [1], [0, 0, 1, 1], [], []>} : vector<8x27xbf16>, vector<27x512xbf16>, vector<8x512xf32> -> vector<8x512xf32>
    %c0_4 = arith.constant 0 : index
    %c0_5 = arith.constant 0 : index
    %c0_6 = arith.constant 0 : index
    %5 = vector.load %arg3[%c0_4, %c0_5, %c0_6] : memref<4x1x512xf32, #tpu.memory_space<vmem>>, vector<1x1x512xf32>
    %6 = vector.shape_cast %5 : vector<1x1x512xf32> to vector<1x512xf32>
    %7 = vector.broadcast %6 : vector<1x512xf32> to vector<8x512xf32>
    %8 = arith.addf %4, %7 : vector<8x512xf32>
    %cst_7 = arith.constant 0.000000e+00 : f32
    %9 = vector.broadcast %cst_7 : f32 to vector<8x512xf32>
    %10 = arith.maximumf %8, %9 : vector<8x512xf32>
    %11 = arith.truncf %10 : vector<8x512xf32> to vector<8x512xbf16>
    %c0_8 = arith.constant 0 : index
    %c0_9 = arith.constant 0 : index
    %c0_10 = arith.constant 0 : index
    %12 = vector.load %arg4[%c0_8, %c0_9, %c0_10] : memref<4x512x256xbf16, #tpu.memory_space<vmem>>, vector<1x512x256xbf16>
    %13 = vector.shape_cast %12 : vector<1x512x256xbf16> to vector<512x256xbf16>
    %cst_11 = arith.constant dense<0.000000e+00> : vector<8x256xf32>
    %14 = tpu.matmul %11, %13, %cst_11 {dimension_numbers = #tpu.dot_dimension_numbers<[1], [0], [0], [1], [0, 0, 1, 1], [], []>} : vector<8x512xbf16>, vector<512x256xbf16>, vector<8x256xf32> -> vector<8x256xf32>
    %c0_12 = arith.constant 0 : index
    %c0_13 = arith.constant 0 : index
    %c0_14 = arith.constant 0 : index
    %15 = vector.load %arg5[%c0_12, %c0_13, %c0_14] : memref<4x1x256xf32, #tpu.memory_space<vmem>>, vector<1x1x256xf32>
    %16 = vector.shape_cast %15 : vector<1x1x256xf32> to vector<1x256xf32>
    %17 = vector.broadcast %16 : vector<1x256xf32> to vector<8x256xf32>
    %18 = arith.addf %14, %17 : vector<8x256xf32>
    %c0_15 = arith.constant 0 : index
    %c0_16 = arith.constant 0 : index
    %19 = vector.load %arg6[%c0_15, %c0_16] : memref<8x256xf32, #tpu.memory_space<vmem>>, vector<8x256xf32>
    tpu.vector_store %arg6[%c0_15, %c0_16], %18 {strides = array<i32>} : memref<8x256xf32, #tpu.memory_space<vmem>>, vector<8x256xf32>,
    %c1 = arith.constant 1 : index
    %c0_17 = arith.constant 0 : index
    %c0_18 = arith.constant 0 : index
    %20 = vector.load %arg2[%c1, %c0_17, %c0_18] : memref<4x27x512xbf16, #tpu.memory_space<vmem>>, vector<1x27x512xbf16>
    %21 = vector.shape_cast %20 : vector<1x27x512xbf16> to vector<27x512xbf16>
    %cst_19 = arith.constant dense<0.000000e+00> : vector<8x512xf32>
    %22 = tpu.matmul %1, %21, %cst_19 {dimension_numbers = #tpu.dot_dimension_numbers<[1], [0], [0], [1], [0, 0, 1, 1], [], []>} : vector<8x27xbf16>, vector<27x512xbf16>, vector<8x512xf32> -> vector<8x512xf32>
    %c1_20 = arith.constant 1 : index
    %c0_21 = arith.constant 0 : index
    %c0_22 = arith.constant 0 : index
    %23 = vector.load %arg3[%c1_20, %c0_21, %c0_22] : memref<4x1x512xf32, #tpu.memory_space<vmem>>, vector<1x1x512xf32>
    %24 = vector.shape_cast %23 : vector<1x1x512xf32> to vector<1x512xf32>
    %25 = vector.broadcast %24 : vector<1x512xf32> to vector<8x512xf32>
    %26 = arith.addf %22, %25 : vector<8x512xf32>
    %cst_23 = arith.constant 0.000000e+00 : f32
    %27 = vector.broadcast %cst_23 : f32 to vector<8x512xf32>
    %28 = arith.maximumf %26, %27 : vector<8x512xf32>
    %29 = arith.truncf %28 : vector<8x512xf32> to vector<8x512xbf16>
    %c1_24 = arith.constant 1 : index
    %c0_25 = arith.constant 0 : index
    %c0_26 = arith.constant 0 : index
    %30 = vector.load %arg4[%c1_24, %c0_25, %c0_26] : memref<4x512x256xbf16, #tpu.memory_space<vmem>>, vector<1x512x256xbf16>
    %31 = vector.shape_cast %30 : vector<1x512x256xbf16> to vector<512x256xbf16>
    %cst_27 = arith.constant dense<0.000000e+00> : vector<8x256xf32>
    %32 = tpu.matmul %29, %31, %cst_27 {dimension_numbers = #tpu.dot_dimension_numbers<[1], [0], [0], [1], [0, 0, 1, 1], [], []>} : vector<8x512xbf16>, vector<512x256xbf16>, vector<8x256xf32> -> vector<8x256xf32>
    %c1_28 = arith.constant 1 : index
    %c0_29 = arith.constant 0 : index
    %c0_30 = arith.constant 0 : index
    %33 = vector.load %arg5[%c1_28, %c0_29, %c0_30] : memref<4x1x256xf32, #tpu.memory_space<vmem>>, vector<1x1x256xf32>
    %34 = vector.shape_cast %33 : vector<1x1x256xf32> to vector<1x256xf32>
    %35 = vector.broadcast %34 : vector<1x256xf32> to vector<8x256xf32>
    %36 = arith.addf %32, %35 : vector<8x256xf32>
    %c0_31 = arith.constant 0 : index
    %c0_32 = arith.constant 0 : index
    %37 = vector.load %arg7[%c0_31, %c0_32] : memref<8x256xf32, #tpu.memory_space<vmem>>, vector<8x256xf32>
    tpu.vector_store %arg7[%c0_31, %c0_32], %36 {strides = array<i32>} : memref<8x256xf32, #tpu.memory_space<vmem>>, vector<8x256xf32>,
    %c2 = arith.constant 2 : index
    %c0_33 = arith.constant 0 : index
    %c0_34 = arith.constant 0 : index
    %38 = vector.load %arg2[%c2, %c0_33, %c0_34] : memref<4x27x512xbf16, #tpu.memory_space<vmem>>, vector<1x27x512xbf16>
    %39 = vector.shape_cast %38 : vector<1x27x512xbf16> to vector<27x512xbf16>
    %cst_35 = arith.constant dense<0.000000e+00> : vector<8x512xf32>
    %40 = tpu.matmul %1, %39, %cst_35 {dimension_numbers = #tpu.dot_dimension_numbers<[1], [0], [0], [1], [0, 0, 1, 1], [], []>} : vector<8x27xbf16>, vector<27x512xbf16>, vector<8x512xf32> -> vector<8x512xf32>
    %c2_36 = arith.constant 2 : index
    %c0_37 = arith.constant 0 : index
    %c0_38 = arith.constant 0 : index
    %41 = vector.load %arg3[%c2_36, %c0_37, %c0_38] : memref<4x1x512xf32, #tpu.memory_space<vmem>>, vector<1x1x512xf32>
    %42 = vector.shape_cast %41 : vector<1x1x512xf32> to vector<1x512xf32>
    %43 = vector.broadcast %42 : vector<1x512xf32> to vector<8x512xf32>
    %44 = arith.addf %40, %43 : vector<8x512xf32>
    %cst_39 = arith.constant 0.000000e+00 : f32
    %45 = vector.broadcast %cst_39 : f32 to vector<8x512xf32>
    %46 = arith.maximumf %44, %45 : vector<8x512xf32>
    %47 = arith.truncf %46 : vector<8x512xf32> to vector<8x512xbf16>
    %c2_40 = arith.constant 2 : index
    %c0_41 = arith.constant 0 : index
    %c0_42 = arith.constant 0 : index
    %48 = vector.load %arg4[%c2_40, %c0_41, %c0_42] : memref<4x512x256xbf16, #tpu.memory_space<vmem>>, vector<1x512x256xbf16>
    %49 = vector.shape_cast %48 : vector<1x512x256xbf16> to vector<512x256xbf16>
    %cst_43 = arith.constant dense<0.000000e+00> : vector<8x256xf32>
    %50 = tpu.matmul %47, %49, %cst_43 {dimension_numbers = #tpu.dot_dimension_numbers<[1], [0], [0], [1], [0, 0, 1, 1], [], []>} : vector<8x512xbf16>, vector<512x256xbf16>, vector<8x256xf32> -> vector<8x256xf32>
    %c2_44 = arith.constant 2 : index
    %c0_45 = arith.constant 0 : index
    %c0_46 = arith.constant 0 : index
    %51 = vector.load %arg5[%c2_44, %c0_45, %c0_46] : memref<4x1x256xf32, #tpu.memory_space<vmem>>, vector<1x1x256xf32>
    %52 = vector.shape_cast %51 : vector<1x1x256xf32> to vector<1x256xf32>
    %53 = vector.broadcast %52 : vector<1x256xf32> to vector<8x256xf32>
    %54 = arith.addf %50, %53 : vector<8x256xf32>
    %c0_47 = arith.constant 0 : index
    %c0_48 = arith.constant 0 : index
    %55 = vector.load %arg8[%c0_47, %c0_48] : memref<8x256xf32, #tpu.memory_space<vmem>>, vector<8x256xf32>
    tpu.vector_store %arg8[%c0_47, %c0_48], %54 {strides = array<i32>} : memref<8x256xf32, #tpu.memory_space<vmem>>, vector<8x256xf32>,
    %c3 = arith.constant 3 : index
    %c0_49 = arith.constant 0 : index
    %c0_50 = arith.constant 0 : index
    %56 = vector.load %arg2[%c3, %c0_49, %c0_50] : memref<4x27x512xbf16, #tpu.memory_space<vmem>>, vector<1x27x512xbf16>
    %57 = vector.shape_cast %56 : vector<1x27x512xbf16> to vector<27x512xbf16>
    %cst_51 = arith.constant dense<0.000000e+00> : vector<8x512xf32>
    %58 = tpu.matmul %1, %57, %cst_51 {dimension_numbers = #tpu.dot_dimension_numbers<[1], [0], [0], [1], [0, 0, 1, 1], [], []>} : vector<8x27xbf16>, vector<27x512xbf16>, vector<8x512xf32> -> vector<8x512xf32>
    %c3_52 = arith.constant 3 : index
    %c0_53 = arith.constant 0 : index
    %c0_54 = arith.constant 0 : index
    %59 = vector.load %arg3[%c3_52, %c0_53, %c0_54] : memref<4x1x512xf32, #tpu.memory_space<vmem>>, vector<1x1x512xf32>
    %60 = vector.shape_cast %59 : vector<1x1x512xf32> to vector<1x512xf32>
    %61 = vector.broadcast %60 : vector<1x512xf32> to vector<8x512xf32>
    %62 = arith.addf %58, %61 : vector<8x512xf32>
    %cst_55 = arith.constant 0.000000e+00 : f32
    %63 = vector.broadcast %cst_55 : f32 to vector<8x512xf32>
    %64 = arith.maximumf %62, %63 : vector<8x512xf32>
    %65 = arith.truncf %64 : vector<8x512xf32> to vector<8x512xbf16>
    %c3_56 = arith.constant 3 : index
    %c0_57 = arith.constant 0 : index
    %c0_58 = arith.constant 0 : index
    %66 = vector.load %arg4[%c3_56, %c0_57, %c0_58] : memref<4x512x256xbf16, #tpu.memory_space<vmem>>, vector<1x512x256xbf16>
    %67 = vector.shape_cast %66 : vector<1x512x256xbf16> to vector<512x256xbf16>
    %cst_59 = arith.constant dense<0.000000e+00> : vector<8x256xf32>
    %68 = tpu.matmul %65, %67, %cst_59 {dimension_numbers = #tpu.dot_dimension_numbers<[1], [0], [0], [1], [0, 0, 1, 1], [], []>} : vector<8x512xbf16>, vector<512x256xbf16>, vector<8x256xf32> -> vector<8x256xf32>
    %c3_60 = arith.constant 3 : index
    %c0_61 = arith.constant 0 : index
    %c0_62 = arith.constant 0 : index
    %69 = vector.load %arg5[%c3_60, %c0_61, %c0_62] : memref<4x1x256xf32, #tpu.memory_space<vmem>>, vector<1x1x256xf32>
    %70 = vector.shape_cast %69 : vector<1x1x256xf32> to vector<1x256xf32>
    %71 = vector.broadcast %70 : vector<1x256xf32> to vector<8x256xf32>
    %72 = arith.addf %68, %71 : vector<8x256xf32>
    %c0_63 = arith.constant 0 : index
    %c0_64 = arith.constant 0 : index
    %73 = vector.load %arg9[%c0_63, %c0_64] : memref<8x256xf32, #tpu.memory_space<vmem>>, vector<8x256xf32>
    tpu.vector_store %arg9[%c0_63, %c0_64], %72 {strides = array<i32>} : memref<8x256xf32, #tpu.memory_space<vmem>>, vector<8x256xf32>,
    return
  }
  func.func @transform_0(%arg0: i32) -> (i32, i32) {
    %c0_i32 = arith.constant 0 : i32
    %c0_i32_0 = arith.constant 0 : i32
    return %arg0, %c0_i32 : i32, i32
  }
  func.func @transform_1(%arg0: i32) -> (i32, i32, i32) {
    %c0_i32 = arith.constant 0 : i32
    %c0_i32_0 = arith.constant 0 : i32
    %c0_i32_1 = arith.constant 0 : i32
    %c0_i32_2 = arith.constant 0 : i32
    return %c0_i32, %c0_i32_0, %c0_i32_1 : i32, i32, i32
  }
  func.func @transform_2(%arg0: i32) -> (i32, i32, i32) {
    %c0_i32 = arith.constant 0 : i32
    %c0_i32_0 = arith.constant 0 : i32
    %c0_i32_1 = arith.constant 0 : i32
    %c0_i32_2 = arith.constant 0 : i32
    return %c0_i32, %c0_i32_0, %c0_i32_1 : i32, i32, i32
  }
  func.func @transform_3(%arg0: i32) -> (i32, i32, i32) {
    %c0_i32 = arith.constant 0 : i32
    %c0_i32_0 = arith.constant 0 : i32
    %c0_i32_1 = arith.constant 0 : i32
    %c0_i32_2 = arith.constant 0 : i32
    return %c0_i32, %c0_i32_0, %c0_i32_1 : i32, i32, i32
  }
  func.func @transform_4(%arg0: i32) -> (i32, i32, i32) {
    %c0_i32 = arith.constant 0 : i32
    %c0_i32_0 = arith.constant 0 : i32
    %c0_i32_1 = arith.constant 0 : i32
    %c0_i32_2 = arith.constant 0 : i32
    return %c0_i32, %c0_i32_0, %c0_i32_1 : i32, i32, i32
  }
  func.func @transform_5(%arg0: i32) -> (i32, i32) {
    %c0_i32 = arith.constant 0 : i32
    %c0_i32_0 = arith.constant 0 : i32
    return %arg0, %c0_i32 : i32, i32
  }
  func.func @transform_6(%arg0: i32) -> (i32, i32) {
    %c0_i32 = arith.constant 0 : i32
    %c0_i32_0 = arith.constant 0 : i32
    return %arg0, %c0_i32 : i32, i32
  }
  func.func @transform_7(%arg0: i32) -> (i32, i32) {
    %c0_i32 = arith.constant 0 : i32
    %c0_i32_0 = arith.constant 0 : i32
    return %arg0, %c0_i32 : i32, i32
  }
  func.func @transform_8(%arg0: i32) -> (i32, i32) {
    %c0_i32 = arith.constant 0 : i32
    %c0_i32_0 = arith.constant 0 : i32
    return %arg0, %c0_i32 : i32, i32
  }
}

</mosaic_0001>

<bundles_post_ra>
// kernel: tpu_custom_call.1
= control target key start
LH: loop header
LB: loop body
LE: loop exit
PB: predicated region body
PF: predicated region fallthrough
CT: control target
= control target key end

     0   :  { %s4780_s0 = inlined_call_operand.vmem [shape: f32[16,27], index: 0, kind: input, shape index: {}]   ;;  %s4781_s1 = inlined_call_operand.vmem [shape: bf16[4,27,512], index: 1, kind: input, shape index: {}]   ;;  %s4782_s2 = inlined_call_operand.vmem [shape: f32[4,1,512], index: 2, kind: input, shape index: {}]   ;;  %s4783_s3 = inlined_call_operand.hbm [shape: bf16[4,512,256], index: 3, kind: input, shape index: {}]   ;;  %s4784_s4 = inlined_call_operand.vmem [shape: f32[4,1,256], index: 4, kind: input, shape index: {}]   ;;  %s4785_s5 = inlined_call_operand.hbm [shape: f32[16,256], index: 5, kind: output, shape index: {0}]   ;;  %s4786_s6 = inlined_call_operand.hbm [shape: f32[16,256], index: 6, kind: output, shape index: {1}]   ;;  %s4787_s7 = inlined_call_operand.hbm [shape: f32[16,256], index: 7, kind: output, shape index: {2}]   ;;  %s4788_s8 = inlined_call_operand.hbm [shape: f32[16,256], index: 8, kind: output, shape index: {3}]  }
   0x1   :  { %4793 = sst [smem:[#allocation15_spill]] %s4780_s0 }
   0x2   :  { %4794 = sst [smem:[#allocation16_spill]] %s4781_s1 }
   0x3   :  { %14 = vsyncpa [#allocation3], 0 }
   0x4   :  { %15 = vsyncpa [#allocation4], 0 }
   0x5   :  { %17 = vsyncpa [#allocation4 + $0x1], 0 }
   0x6   :  { %18 = vsyncpa [#allocation7], 0 }
   0x7   :  { %20 = vsyncpa [#allocation7 + $0x1], 0 }
   0x8   :  { %21 = vsyncpa [#allocation10], 0 }
   0x9   :  { %23 = vsyncpa [#allocation10 + $0x1], 0  ;;  %s4317_s27 = smov 0   ;;  %s4319_s28 = smov 0  }
   0xa   :  { %s4321_s29 = smov 0   ;;  %s4323_s30 = smov 0  }
   0xb LB: > { %s4338_s9 = sadd.s32 4294967295, %s4261_s30   ;;  %s4792_s10 = sadd.s32 4294967294, %s4261_s30   ;;  %s4261_s30 = sphi %s4323_s30, %s4810_s30   ;;  %s4257_s29 = sphi %s4321_s29, %s4809_s29   ;;  %s4253_s28 = sphi %s4319_s28, %s4808_s28   ;;  %s4249_s27 = sphi %s4317_s27, %s4807_s27  }
   0xc   : > { %s4342_s11 = sadd.s32 1, %s4261_s30   ;;  %s146_s12 = sadd.s32 1, %s4257_s29 }
   0xd   : > { %s143_s13 = ssub.s32 %s4261_s30, %s4342_s11  ;;  %p156_p0 = scmp.ne.s32.totalorder %s4257_s29, %s4253_s28 }
   0xe   : > { %p144_p1 = scmp.eq.s32.totalorder %s143_s13, 0  ;;  %p157_p2 = scmp.eq.s32.totalorder %s4338_s9, 1 }
   0xf   : > { %p162_p3 = scmp.ne.s32.totalorder %s4253_s28, %s4249_s27  ;;  %p163_p4 = scmp.eq.s32.totalorder %s4792_s10, 1 }
  0x10   : > { %s4355_s14 = scalar_select %p144_p1, %s4257_s29, %s146_s12  }
  0x11   : > { %p4357_p5 = por %p157_p2, %p156_p0  ;;  %p4361_p6 = por %p163_p4, %p162_p3 }
  0x12   : > { %p3196_p7 = scmp.ge.s32.totalorder %s4261_s30, 1  ;;  %p248_p8 = scmp.lt.s32.totalorder %s4261_s30, 3 }
  0x13   : > { %s4795_s15 = scalar_select %p4357_p5, 1, 0 }
  0x14   : > { %s4796_s16 = scalar_select %p4361_p6, 1, 0 }
  0x15   : > { %p4789_p9 = scmp.eq.s32.totalorder %s4338_s9, 0  ;;  %p4368_p10 = pnand %p3196_p7, %p248_p8 }
  0x16   : > { %s4263_s18 = smov [#allocation2]   ;;  %s4075_s23 = scalar_lea.hbm %s4783_s3, 32768 }
  0x17   : > { %s4797_s17 = scalar_select %p4368_p10, 1, 0 }
  0x18   : > { %s266_s19 = sshll.u32 %s4263_s18, 4  ;;  %p3586_p11 = pneg %p4368_p10  ;;  %s267_s19 = int_to_ptr.vmem [resolvable:$true] %s266_s19 }
  0x19   : > { %p4076_p13 = scmp.ne.s32.totalorder %s4783_s3, %s4075_s23  ;;  %p4082_p3 = scmp.lt.u32.totalorder %s4075_s23, %s4783_s3 }
  0x1a   : > { %p4376_p12 = pnand %p4789_p9, %p3586_p11 }
  0x1c   : > { %p4077_p0 = pneg %p4376_p12 }
  0x1e   : > { %p4078_p1 = pnand %p4077_p0, %p4076_p13 }
  0x20   : > { %p4079_p2 = pneg %p4078_p1 }
  0x22   : > { %p4084_p4 = pnand %p4082_p3, %p4079_p2 }
  0x24   : > { %4087 = shalt.err (!%p4084_p4)
}
  0x25   : > { %s4088_s13 = scalar_lea.vmem %s267_s19, 32768  ;;  %p4096_p9 = scmp.lt.s32.totalorder %s267_s19, %s267_s19 }
  0x26   : > { %p4089_p7 = scmp.ne.s32.totalorder %s267_s19, %s4088_s13  ;;  %p4097_p6 = scmp.lt.s32.totalorder %s4088_s13, %s4088_s13 }
  0x28   : > { %p4091_p8 = pnand %p4089_p7, %p4077_p0  ;;  %p4098_p5 = por %p4097_p6, %p4096_p9 }
  0x2a   : > { %p4092_p11 = pneg %p4091_p8 }
  0x2c   : > { %p4099_p10 = pnand %p4098_p5, %p4092_p11 }
  0x2e   : > { %4102 = shalt.err (!%p4099_p10)
}
  0x2f   : > { %s4264_s18 = smov 128   ;;  %s4265_s21 = smov 8  }
  0x30   : > { %3589 = dma.hbm_to_vmem [thread:$0]  (!%p4376_p12), %s4783_s3, 32768, %s267_s19, [#allocation3], %s4264_s18, %s4264_s18, %s4265_s21  }
  0x31   : > { %p4799_p13 = scmp.ne.s32.totalorder %s4797_s17, 0 }
  0x32   : > { %p4800_p1 = scmp.eq.s32.totalorder (!%p4799_p13), %s4338_s9, 0 }
  0x33   : > { %292 = sbr.rel (%p4799_p13) target bundleno = 903 (0x387), region = 40 }
  0x3a   : > { %4232 = dma.done.wait (%p4800_p1), [#allocation3], 32768   ;;  %p4801_p0 = pmov %p4800_p1 }
  0x3b   : > { %v4266_v0 = vmov 0   ;;  %p340_p5 = scmp.lt.s32.totalorder %s4338_s9, 1  ;;  %vm417_vm0 = vcmask 1044480   ;;  %vm418_vm1 = vcmask 1045504   ;;  %v4267_v1 = vmov 65535   ;;  %s4802_s1 = sld [smem:[#allocation16_spill]] }
  0x3c   : > { %4234 = vsyncadd (%p4801_p0), [#allocation3], 4294934528  ;;  %465 = vmatprep.mubr.bf16.mxu0 %v4266_v0  ;;  %1115 = vmatprep.mubr.bf16.mxu1 %v4266_v0  ;;  %v419_v2 = vsel %vm417_vm0, 4294967295, %v4267_v1  ;;  %s4803_s0 = sld [smem:[#allocation15_spill]]  ;;  %vm413_vm2 = vcmask 220160   ;;  %s4582_s17 = sand.u32 1, %s4253_s28  }
  0x3d   : > { %s341_s20 = scalar_select %p340_p5, %s4338_s9, 1  ;;  %v4421_v7 = vsel %vm418_vm1, %v419_v2, 0  ;;  %v3669_v30 = vld [vmem:[#allocation2 + $0x4] ss:$8 sps:$4 sm:$0xff]   ;;  %v3667_v32 = vld [vmem:[#allocation2] ss:$8 sps:$4 sm:$0xff]  }
  0x3e   : > { %v3672_v31 = vld [vmem:[#allocation2 + $0x204] ss:$8 sps:$4 sm:$0xff]   ;;  %v3670_v33 = vld [vmem:[#allocation2 + $0x200] ss:$8 sps:$4 sm:$0xff]   ;;  %v3675_v34 = vld [vmem:[#allocation2 + $0x14] ss:$8 sps:$4 sm:$0xff]  }
  0x3f   : > { %s3205_s19 = sshll.u32 %s341_s20, 3  ;;  %v3678_v35 = vld [vmem:[#allocation2 + $0x214] ss:$8 sps:$4 sm:$0xff]   ;;  %v3673_v36 = vld [vmem:[#allocation2 + $0x10] ss:$8 sps:$4 sm:$0xff]   ;;  %s4591_s12 = sshll.u32 %s4582_s17, 4 }
  0x40   : > { %v3676_v37 = vld [vmem:[#allocation2 + $0x210] ss:$8 sps:$4 sm:$0xff]   ;;  %v3681_v38 = vld [vmem:[#allocation2 + $0x24] ss:$8 sps:$4 sm:$0xff]   ;;  %v3679_v40 = vld [vmem:[#allocation2 + $0x20] ss:$8 sps:$4 sm:$0xff]  }
  0x41   : > { %v3643_v3 = vld [vmem:[%s4802_s1 + $0x4] ss:$16 sps:$4 sm:$0xff]   ;;  %v3647_v5 = vld [vmem:[%s4802_s1] ss:$16 sps:$4 sm:$0xff]   ;;  %v3655_v17 = vld [vmem:[%s4802_s1 + $0x8] ss:$16 sps:$4 sm:$0xff]  }
  0x42   : > { %v3645_v4 = vld [vmem:[%s4802_s1 + $0x44] ss:$16 sps:$4 sm:$0xff]   ;;  %s343_s18 = scalar_lea.vmem %s4803_s0, %s3205_s19  ;;  %433 = vmatprep.subr.bf16.mxu0 %v3643_v3  ;;  %v3648_v6 = vld [vmem:[%s4802_s1 + $0x40] ss:$16 sps:$4 sm:$0xff]   ;;  %v3657_v18 = vld [vmem:[%s4802_s1 + $0xc] ss:$16 sps:$4 sm:$0xff]  }
  0x43   : > { %1083 = vmatprep.subr.bf16.mxu1 %v3645_v4  ;;  %v3649_v8 = vld [vmem:[%s4802_s1 + $0x24] ss:$16 sps:$4 sm:$0x3f]   ;;  %434 = vmatpush1.bf16.msra.mxu0 %v3647_v5  ;;  %v3653_v12 = vld [vmem:[%s4802_s1 + $0x20] ss:$16 sps:$4 sm:$0x3f]  }
  0x44   : > { %1084 = vmatpush1.bf16.msra.mxu1 %v3648_v6  ;;  %v3651_v9 = vld [vmem:[%s4802_s1 + $0x64] ss:$16 sps:$4 sm:$0x3f]   ;;  %v425_v11 = vand.u32 %v3649_v8, %v4421_v7  ;;  %v3654_v13 = vld [vmem:[%s4802_s1 + $0x60] ss:$16 sps:$4 sm:$0x3f]   ;;  %v422_v15 = vand.u32 %v3653_v12, %v4421_v7 }
  0x45   : > { %v345_v10 = vld [vmem:[%s343_s18] sm:$0xff]  ;;  %v1075_v14 = vand.u32 %v3651_v9, %v4421_v7  ;;  %v1072_v16 = vand.u32 %v3654_v13, %v4421_v7  ;;  %v3658_v20 = vld [vmem:[%s4802_s1 + $0x48] ss:$16 sps:$4 sm:$0xff]   ;;  %v3660_v21 = vld [vmem:[%s4802_s1 + $0x4c] ss:$16 sps:$4 sm:$0xff]   ;;  %s4606_s18 = scalar_lea.vmem [#allocation5], %s4591_s12 }
  0x46   : > { %435 = vmatprep.subr.bf16.mxu0 %v425_v11  ;;  %v4445_v19 = vpack.c.bf16 %v345_v10, %v345_v10  ;;  %v3661_v22 = vld [vmem:[%s4802_s1 + $0x28] ss:$16 sps:$4 sm:$0x3f]   ;;  %v3663_v23 = vld [vmem:[%s4802_s1 + $0x2c] ss:$16 sps:$4 sm:$0x3f]  }
  0x47   : > { %1085 = vmatprep.subr.bf16.mxu1 %v1075_v14  ;;  %436 = vmatpush1.bf16.msra.mxu0 %v422_v15  ;;  %v3664_v24 = vld [vmem:[%s4802_s1 + $0x68] ss:$16 sps:$4 sm:$0x3f]   ;;  %v3666_v25 = vld [vmem:[%s4802_s1 + $0x6c] ss:$16 sps:$4 sm:$0x3f]   ;;  %v431_v26 = vand.u32 %v3663_v23, %v4421_v7  ;;  %v428_v28 = vand.u32 %v3661_v22, %v4421_v7 }
  0x48   : > { %1086 = vmatpush1.bf16.msra.mxu1 %v1072_v16  ;;  %474 = vmatprep.subr.bf16.mxu0 %v3657_v18  ;;  %v1081_v27 = vand.u32 %v3666_v25, %v4421_v7  ;;  %v1078_v29 = vand.u32 %v3664_v24, %v4421_v7  ;;  %v3684_v39 = vld [vmem:[#allocation2 + $0x224] ss:$8 sps:$4 sm:$0xff]   ;;  %v3682_v41 = vld [vmem:[#allocation2 + $0x220] ss:$8 sps:$4 sm:$0xff]   ;;  %v3687_v42 = vld [vmem:[#allocation2 + $0x34] ss:$8 sps:$4 sm:$0xff]  }
  0x49   : > { %1124 = vmatprep.subr.bf16.mxu1 %v3660_v21  ;;  %v3690_v43 = vld [vmem:[#allocation2 + $0x234] ss:$8 sps:$4 sm:$0xff]   ;;  %v3685_v44 = vld [vmem:[#allocation2 + $0x30] ss:$8 sps:$4 sm:$0xff]   ;;  %v3693_v46 = vld [vmem:[#allocation2 + $0x44] ss:$8 sps:$4 sm:$0xff]  }
  0x4a   : > { %3214 = vmatmul.mubr.msk.bf16.vlgmr.msra.gmra.mrb[0].mxu0 %vm413_vm2, %v4445_v19  ;;  %v3688_v45 = vld [vmem:[#allocation2 + $0x230] ss:$8 sps:$4 sm:$0xff]   ;;  %v3696_v47 = vld [vmem:[#allocation2 + $0x244] ss:$8 sps:$4 sm:$0xff]   ;;  %v3691_v48 = vld [vmem:[#allocation2 + $0x40] ss:$8 sps:$4 sm:$0xff]  }
  0x4b   : > { %3297 = vmatmul.mubr.msk.bf16.vlgmr.msra.gmra.mrb[0].mxu1 %vm413_vm2, %v4445_v19  ;;  %475 = vmatpush1.bf16.msra.mxu0 %v3655_v17  ;;  %v3694_v49 = vld [vmem:[#allocation2 + $0x240] ss:$8 sps:$4 sm:$0xff]   ;;  %v3699_v50 = vld [vmem:[#allocation2 + $0x54] ss:$8 sps:$4 sm:$0xff]   ;;  %v3697_v52 = vld [vmem:[#allocation2 + $0x50] ss:$8 sps:$4 sm:$0xff]  }
  0x4c   : > { %1125 = vmatpush1.bf16.msra.mxu1 %v3658_v20  ;;  %476 = vmatprep.subr.bf16.mxu0 %v431_v26  ;;  %v3702_v51 = vld [vmem:[#allocation2 + $0x254] ss:$8 sps:$4 sm:$0xff]   ;;  %v3700_v53 = vld [vmem:[#allocation2 + $0x250] ss:$8 sps:$4 sm:$0xff]   ;;  %v3705_v54 = vld [vmem:[#allocation2 + $0x64] ss:$8 sps:$4 sm:$0xff]  }
  0x4d   : > { %506 = vmatprep.mubr.bf16.mxu0 %v4266_v0  ;;  %1126 = vmatprep.subr.bf16.mxu1 %v1081_v27  ;;  %v3708_v55 = vld [vmem:[#allocation2 + $0x264] ss:$8 sps:$4 sm:$0xff]   ;;  %v3703_v56 = vld [vmem:[#allocation2 + $0x60] ss:$8 sps:$4 sm:$0xff]   ;;  %v3711_v58 = vld [vmem:[#allocation2 + $0x74] ss:$8 sps:$4 sm:$0xff]  }
  0x4e   : > { %1156 = vmatprep.mubr.bf16.mxu1 %v4266_v0  ;;  %v3706_v57 = vld [vmem:[#allocation2 + $0x260] ss:$8 sps:$4 sm:$0xff]   ;;  %v3714_v59 = vld [vmem:[#allocation2 + $0x274] ss:$8 sps:$4 sm:$0xff]   ;;  %v3709_v60 = vld [vmem:[#allocation2 + $0x70] ss:$8 sps:$4 sm:$0xff]  }
  0x4f   : > { %477 = vmatpush1.bf16.msra.mxu0 %v428_v28  ;;  %v3712_v61 = vld [vmem:[#allocation2 + $0x270] ss:$8 sps:$4 sm:$0xff]   ;;  %v3717_v62 = vld [vmem:[#allocation2 + $0x84] ss:$8 sps:$4 sm:$0xff]   ;;  %v3715_v1 = vld [vmem:[#allocation2 + $0x80] ss:$8 sps:$4 sm:$0xff]  }
  0x50   : > { %1127 = vmatpush1.bf16.msra.mxu1 %v1078_v29  ;;  %919 = vmatprep.subr.bf16.mxu0 %v3669_v30  ;;  %v3720_v63 = vld [vmem:[#allocation2 + $0x284] ss:$8 sps:$4 sm:$0xff]   ;;  %v3718_v2 = vld [vmem:[#allocation2 + $0x280] ss:$8 sps:$4 sm:$0xff]   ;;  %v3723_v3 = vld [vmem:[#allocation2 + $0x94] ss:$8 sps:$4 sm:$0xff]  }
  0x51   : > { %1571 = vmatprep.subr.bf16.mxu1 %v3672_v31  ;;  %v3726_v4 = vld [vmem:[#allocation2 + $0x294] ss:$8 sps:$4 sm:$0xff]   ;;  %v3721_v5 = vld [vmem:[#allocation2 + $0x90] ss:$8 sps:$4 sm:$0xff]   ;;  %v3729_v8 = vld [vmem:[#allocation2 + $0xa4] ss:$8 sps:$4 sm:$0xff]  }
  0x52   : > { %3215 = vmatmul.mubr.msk.bf16.vlgmr.msra.gmra.mrb[4].mxu0 %vm413_vm2, %v4445_v19  ;;  %v3724_v6 = vld [vmem:[#allocation2 + $0x290] ss:$8 sps:$4 sm:$0xff]   ;;  %v3732_v9 = vld [vmem:[#allocation2 + $0x2a4] ss:$8 sps:$4 sm:$0xff]   ;;  %v3727_v10 = vld [vmem:[#allocation2 + $0xa0] ss:$8 sps:$4 sm:$0xff]  }
  0x53   : > { %3298 = vmatmul.mubr.msk.bf16.vlgmr.msra.gmra.mrb[4].mxu1 %vm413_vm2, %v4445_v19  ;;  %920 = vmatpush1.bf16.msra.mxu0 %v3667_v32  ;;  %v3730_v11 = vld [vmem:[#allocation2 + $0x2a0] ss:$8 sps:$4 sm:$0xff]   ;;  %v3735_v12 = vld [vmem:[#allocation2 + $0xb4] ss:$8 sps:$4 sm:$0xff]   ;;  %v3733_v14 = vld [vmem:[#allocation2 + $0xb0] ss:$8 sps:$4 sm:$0xff]  }
  0x54   : > { %1572 = vmatpush1.bf16.msra.mxu1 %v3670_v33  ;;  %921 = vmatprep.subr.bf16.mxu0 %v3675_v34  ;;  %v3738_v13 = vld [vmem:[#allocation2 + $0x2b4] ss:$8 sps:$4 sm:$0xff]   ;;  %v3736_v15 = vld [vmem:[#allocation2 + $0x2b0] ss:$8 sps:$4 sm:$0xff]   ;;  %v3741_v16 = vld [vmem:[#allocation2 + $0xc4] ss:$8 sps:$4 sm:$0xff]  }
  0x55   : > { %1573 = vmatprep.subr.bf16.mxu1 %v3678_v35  ;;  %v3744_v17 = vld [vmem:[#allocation2 + $0x2c4] ss:$8 sps:$4 sm:$0xff]   ;;  %v3739_v18 = vld [vmem:[#allocation2 + $0xc0] ss:$8 sps:$4 sm:$0xff]   ;;  %v3747_v21 = vld [vmem:[#allocation2 + $0xd4] ss:$8 sps:$4 sm:$0xff]   ;;  %v357_v35 = vlaneseq }
  0x56   : > { %v3742_v20 = vld [vmem:[#allocation2 + $0x2c0] ss:$8 sps:$4 sm:$0xff]   ;;  %v3750_v22 = vld [vmem:[#allocation2 + $0x2d4] ss:$8 sps:$4 sm:$0xff]   ;;  %v3745_v23 = vld [vmem:[#allocation2 + $0xd0] ss:$8 sps:$4 sm:$0xff]  }
  0x57   : > { %922 = vmatpush1.bf16.msra.mxu0 %v3673_v36  ;;  %v3748_v24 = vld [vmem:[#allocation2 + $0x2d0] ss:$8 sps:$4 sm:$0xff]   ;;  %v3753_v25 = vld [vmem:[#allocation2 + $0xe4] ss:$8 sps:$4 sm:$0xff]   ;;  %v3751_v27 = vld [vmem:[#allocation2 + $0xe0] ss:$8 sps:$4 sm:$0xff]  }
  0x58   : > { %1574 = vmatpush1.bf16.msra.mxu1 %v3676_v37  ;;  %923 = vmatprep.subr.bf16.mxu0 %v3681_v38  ;;  %v3756_v26 = vld [vmem:[#allocation2 + $0x2e4] ss:$8 sps:$4 sm:$0xff]   ;;  %v3754_v28 = vld [vmem:[#allocation2 + $0x2e0] ss:$8 sps:$4 sm:$0xff]   ;;  %v3759_v29 = vld [vmem:[#allocation2 + $0xf4] ss:$8 sps:$4 sm:$0xff]  }
  0x59   : > { %1575 = vmatprep.subr.bf16.mxu1 %v3684_v39  ;;  %v3762_v30 = vld [vmem:[#allocation2 + $0x2f4] ss:$8 sps:$4 sm:$0xff]   ;;  %v3757_v31 = vld [vmem:[#allocation2 + $0xf0] ss:$8 sps:$4 sm:$0xff]   ;;  %v3765_v33 = vld [vmem:[#allocation2 + $0x104] ss:$8 sps:$4 sm:$0xff]  }
  0x5a   : > { %v3760_v32 = vld [vmem:[#allocation2 + $0x2f0] ss:$8 sps:$4 sm:$0xff]   ;;  %v3768_v34 = vld [vmem:[#allocation2 + $0x304] ss:$8 sps:$4 sm:$0xff]   ;;  %v358_v36 = vshrl.u32 %v357_v35, 7  ;;  %s4610_s20 = scalar_lea.vmem [#allocation6], %s4591_s12 }
  0x5b   : > { %924 = vmatpush1.bf16.msra.mxu0 %v3679_v40  ;;  %v4484_v38 = vld [vmem:[%s4782_s2] sm:$0xf]  ;;  %v3288_v39 = vld [vmem:[%s4782_s2 + $0x4] sm:$0xf]  ;;  %v3786_v35 = vld [vmem:[#allocation2 + $0x334] ss:$8 sps:$4 sm:$0xff]  }
  0x5c   : > { %1576 = vmatpush1.bf16.msra.mxu1 %v3682_v41  ;;  %925 = vmatprep.subr.bf16.mxu0 %v3687_v42  ;;  %v4479_v37 = vsub.s32 0, %v358_v36  ;;  %v4489_v40 = vsub.s32 1, %v358_v36  ;;  %s2964_s23 = sand.u32 1, %s4338_s9   ;;  %s4635_s25 = sshll.u32 %s4338_s9, 8 }
  0x5d   : > { %1577 = vmatprep.subr.bf16.mxu1 %v3690_v43  ;;  %s4641_s13 = scalar_lea.hbm %s4786_s6, %s4635_s25  ;;  %s3003_s21 = sshll.u32 %s4610_s20, 4  ;;  %s3004_s21 = int_to_ptr.vmem [resolvable:$true] %s3003_s21 }
  0x5e   : > { %v360_v41 = vrot.slane %v4484_v38, %v4479_v37  ;;  %v1018_v42 = vrot.slane %v3288_v39, %v4479_v37  ;;  %v364_v43 = vrot.slane %v4484_v38, %v4489_v40  ;;  %s4644_s22 = scalar_lea.sflag [#allocation7], %s2964_s23  ;;  %s4103_s24 = scalar_lea.vmem %s3004_s21, 256 }
  0x5f   : > { %926 = vmatpush1.bf16.msra.mxu0 %v3685_v44  ;;  %v1022_v44 = vrot.slane %v3288_v39, %v4489_v40  ;;  %p4104_p6 = scmp.ne.s32.totalorder %s3004_s21, %s4103_s24  ;;  %p4804_p9 = scmp.ne.s32.totalorder %s4795_s15, 0 }
  0x60   : > { %1578 = vmatpush1.bf16.msra.mxu1 %v3688_v45  ;;  %927 = vmatprep.subr.bf16.mxu0 %v3693_v46  ;;  %s4268_s10 = smov [#allocation6]  }
  0x61   : > { %1579 = vmatprep.subr.bf16.mxu1 %v3696_v47  ;;  %p4105_p10 = pnand %p4104_p6, %p4804_p9  ;;  %s4107_s0 = sshll.u32 %s4268_s10, 4  ;;  %s4108_s0 = int_to_ptr.vmem [resolvable:$false] %s4107_s0 }
  0x62   : > { %s4109_s9 = scalar_lea.vmem %s4108_s0, 512  ;;  %p4110_p2 = scmp.lt.s32.totalorder %s3004_s21, %s4108_s0 }
  0x63   : > { %928 = vmatpush1.bf16.msra.mxu0 %v3691_v48  ;;  %p4106_p12 = pneg %p4105_p10  ;;  %p4111_p3 = scmp.lt.s32.totalorder %s4109_s9, %s4103_s24 }
  0x64   : > { %1580 = vmatpush1.bf16.msra.mxu1 %v3694_v49  ;;  %929 = vmatprep.subr.bf16.mxu0 %v3699_v50 }
  0x65   : > { %1581 = vmatprep.subr.bf16.mxu1 %v3702_v51  ;;  %v4497_v51 = vsub.s32 2, %v358_v36  ;;  %p4112_p4 = por %p4111_p3, %p4110_p2 }
  0x67   : > { %930 = vmatpush1.bf16.msra.mxu0 %v3697_v52  ;;  %p4113_p7 = pnand %p4112_p4, %p4106_p12 }
  0x68   : > { %1582 = vmatpush1.bf16.msra.mxu1 %v3700_v53  ;;  %931 = vmatprep.subr.bf16.mxu0 %v3705_v54 }
  0x69   : > { %1583 = vmatprep.subr.bf16.mxu1 %v3708_v55 }
  0x6b   : > { %932 = vmatpush1.bf16.msra.mxu0 %v3703_v56  ;;  %v4499_v56 = vsub.s32 3, %v358_v36  ;;  %v3781_v36 = vld [vmem:[#allocation2 + $0x130] ss:$8 sps:$4 sm:$0xff]  }
  0x6c   : > { %1584 = vmatpush1.bf16.msra.mxu1 %v3706_v57  ;;  %933 = vmatprep.subr.bf16.mxu0 %v3711_v58 }
  0x6d   : > { %1585 = vmatprep.subr.bf16.mxu1 %v3714_v59 }
  0x6f   : > { %934 = vmatpush1.bf16.msra.mxu0 %v3709_v60 }
  0x70   : > { %1586 = vmatpush1.bf16.msra.mxu1 %v3712_v61  ;;  %935 = vmatprep.subr.bf16.mxu0 %v3717_v62 }
  0x71   : > { %1587 = vmatprep.subr.bf16.mxu1 %v3720_v63  ;;  %v1026_v63 = vrot.slane %v3288_v39, %v4497_v51 }
  0x73   : > { %936 = vmatpush1.bf16.msra.mxu0 %v3715_v1 }
  0x74   : > { %1588 = vmatpush1.bf16.msra.mxu1 %v3718_v2  ;;  %937 = vmatprep.subr.bf16.mxu0 %v3723_v3  ;;  %v3763_v3 = vld [vmem:[#allocation2 + $0x100] ss:$8 sps:$4 sm:$0xff]  }
  0x75   : > { %1589 = vmatprep.subr.bf16.mxu1 %v3726_v4  ;;  %v3766_v4 = vld [vmem:[#allocation2 + $0x300] ss:$8 sps:$4 sm:$0xff]  }
  0x77   : > { %938 = vmatpush1.bf16.msra.mxu0 %v3721_v5  ;;  %v372_v5 = vrot.slane %v4484_v38, %v4499_v56 }
  0x78   : > { %1590 = vmatpush1.bf16.msra.mxu1 %v3724_v6  ;;  %939 = vmatprep.subr.bf16.mxu0 %v3729_v8  ;;  %v1030_v6 = vrot.slane %v3288_v39, %v4499_v56  ;;  %v3784_v39 = vld [vmem:[#allocation2 + $0x330] ss:$8 sps:$4 sm:$0xff]  }
  0x79   : > { %1591 = vmatprep.subr.bf16.mxu1 %v3732_v9 }
  0x7b   : > { %940 = vmatpush1.bf16.msra.mxu0 %v3727_v10  ;;  %v3771_v10 = vld [vmem:[#allocation2 + $0x114] ss:$8 sps:$4 sm:$0xff]  }
  0x7c   : > { %1592 = vmatpush1.bf16.msra.mxu1 %v3730_v11  ;;  %941 = vmatprep.subr.bf16.mxu0 %v3735_v12  ;;  %v3774_v11 = vld [vmem:[#allocation2 + $0x314] ss:$8 sps:$4 sm:$0xff]  }
  0x7d   : > { %1593 = vmatprep.subr.bf16.mxu1 %v3738_v13 }
  0x7f   : > { %942 = vmatpush1.bf16.msra.mxu0 %v3733_v14 }
  0x80   : > { %1594 = vmatpush1.bf16.msra.mxu1 %v3736_v15  ;;  %943 = vmatprep.subr.bf16.mxu0 %v3741_v16 }
  0x81   : > { %1595 = vmatprep.subr.bf16.mxu1 %v3744_v17  ;;  %v3769_v17 = vld [vmem:[#allocation2 + $0x110] ss:$8 sps:$4 sm:$0xff]  }
  0x83   : > { %944 = vmatpush1.bf16.msra.mxu0 %v3739_v18  ;;  %v3772_v18 = vld [vmem:[#allocation2 + $0x310] ss:$8 sps:$4 sm:$0xff]  }
  0x84   : > { %1596 = vmatpush1.bf16.msra.mxu1 %v3742_v20  ;;  %945 = vmatprep.subr.bf16.mxu0 %v3747_v21 }
  0x85   : > { %1597 = vmatprep.subr.bf16.mxu1 %v3750_v22 }
  0x87   : > { %946 = vmatpush1.bf16.msra.mxu0 %v3745_v23 }
  0x88   : > { %1598 = vmatpush1.bf16.msra.mxu1 %v3748_v24  ;;  %947 = vmatprep.subr.bf16.mxu0 %v3753_v25  ;;  %v3777_v24 = vld [vmem:[#allocation2 + $0x124] ss:$8 sps:$4 sm:$0xff]  }
  0x89   : > { %1599 = vmatprep.subr.bf16.mxu1 %v3756_v26  ;;  %v3780_v25 = vld [vmem:[#allocation2 + $0x324] ss:$8 sps:$4 sm:$0xff]  }
  0x8b   : > { %948 = vmatpush1.bf16.msra.mxu0 %v3751_v27 }
  0x8c   : > { %1600 = vmatpush1.bf16.msra.mxu1 %v3754_v28  ;;  %949 = vmatprep.subr.bf16.mxu0 %v3759_v29 }
  0x8d   : > { %1601 = vmatprep.subr.bf16.mxu1 %v3762_v30  ;;  %v3775_v30 = vld [vmem:[#allocation2 + $0x120] ss:$8 sps:$4 sm:$0xff]  }
  0x8f   : > { %950 = vmatpush1.bf16.msra.mxu0 %v3757_v31  ;;  %v3778_v31 = vld [vmem:[#allocation2 + $0x320] ss:$8 sps:$4 sm:$0xff]  }
  0x90   : > { %1602 = vmatpush1.bf16.msra.mxu1 %v3760_v32  ;;  %960 = vmatprep.subr.bf16.mxu0 %v3765_v33 }
  0x91   : > { %1612 = vmatprep.subr.bf16.mxu1 %v3768_v34  ;;  %v3783_v34 = vld [vmem:[#allocation2 + $0x134] ss:$8 sps:$4 sm:$0xff]  }
 0x11d   : > { %v467_v45 = vpop.f32.mrb[0].mxu0 }
 0x11e   : > { %v1117_v46 = vpop.f32.mrb[0].mxu1  ;;  %v468_v47 = vadd.f32 %v467_v45, %v360_v41  ;;  %v469_v49 = vpop.f32.mrb[1].mxu0  ;;  %v3789_v41 = vld [vmem:[#allocation2 + $0x144] ss:$8 sps:$4 sm:$0xff]   ;;  %v3795_v45 = vld [vmem:[#allocation2 + $0x154] ss:$8 sps:$4 sm:$0xff]  }
 0x11f   : > { %v1118_v48 = vadd.f32 %v1117_v46, %v1018_v42  ;;  %v1119_v50 = vpop.f32.mrb[1].mxu1  ;;  %v470_v52 = vadd.f32 %v469_v49, %v364_v43  ;;  %v471_v54 = vpop.f32.mrb[2].mxu0  ;;  %v3792_v42 = vld [vmem:[#allocation2 + $0x344] ss:$8 sps:$4 sm:$0xff]   ;;  %v3787_v43 = vld [vmem:[#allocation2 + $0x140] ss:$8 sps:$4 sm:$0xff]  }
 0x120   : > { %v1120_v53 = vadd.f32 %v1119_v50, %v1022_v44  ;;  %v1121_v55 = vpop.f32.mrb[2].mxu1  ;;  %v515_v57 = vmax.f32 %v468_v47, 0.0  ;;  %v472_v59 = vpop.f32.mrb[3].mxu0  ;;  %v3790_v44 = vld [vmem:[#allocation2 + $0x340] ss:$8 sps:$4 sm:$0xff]  }
 0x121   : > { %v1165_v58 = vmax.f32 %v1118_v48, 0.0  ;;  %v1122_v60 = vpop.f32.mrb[3].mxu1  ;;  %v516_v61 = vmax.f32 %v470_v52, 0.0  ;;  %v3798_v46 = vld [vmem:[#allocation2 + $0x354] ss:$8 sps:$4 sm:$0xff]  }
 0x122   : > { %v1166_v62 = vmax.f32 %v1120_v53, 0.0  ;;  %v519_v8 = vpack.c.bf16 %v515_v57, %v515_v57  ;;  %v3793_v47 = vld [vmem:[#allocation2 + $0x150] ss:$8 sps:$4 sm:$0xff]   ;;  %v3801_v49 = vld [vmem:[#allocation2 + $0x164] ss:$8 sps:$4 sm:$0xff]  }
 0x123   : > { %v520_v1 = vpack.c.bf16 %v516_v61, %v516_v61  ;;  %v1169_v9 = vpack.c.bf16 %v1165_v58, %v1165_v58  ;;  %v3796_v48 = vld [vmem:[#allocation2 + $0x350] ss:$8 sps:$4 sm:$0xff]   ;;  %v3804_v50 = vld [vmem:[#allocation2 + $0x364] ss:$8 sps:$4 sm:$0xff]   ;;  %v3799_v52 = vld [vmem:[#allocation2 + $0x160] ss:$8 sps:$4 sm:$0xff]  }
 0x124   : > { %v1170_v2 = vpack.c.bf16 %v1166_v62, %v1166_v62  ;;  %v3802_v53 = vld [vmem:[#allocation2 + $0x360] ss:$8 sps:$4 sm:$0xff]   ;;  %v3807_v54 = vld [vmem:[#allocation2 + $0x174] ss:$8 sps:$4 sm:$0xff]   ;;  %v3805_v57 = vld [vmem:[#allocation2 + $0x170] ss:$8 sps:$4 sm:$0xff]  }
 0x125   : > { %951 = vmatprep.mubr.bf16.mxu0 %v520_v1  ;;  %v4505_v12 = vpop.f32.mrb[4].mxu0  ;;  %v3810_v55 = vld [vmem:[#allocation2 + $0x374] ss:$8 sps:$4 sm:$0xff]   ;;  %v3808_v58 = vld [vmem:[#allocation2 + $0x370] ss:$8 sps:$4 sm:$0xff]  }
 0x126   : > { %1603 = vmatprep.mubr.bf16.mxu1 %v1170_v2  ;;  %v1158_v13 = vpop.f32.mrb[4].mxu1  ;;  %952 = vmatmul.mubr.bf16.vlgmr.msra.gmra.mrb[8].mxu0 %v519_v8  ;;  %v510_v15 = vpop.f32.mrb[5].mxu0  ;;  %v3813_v59 = vld [vmem:[#allocation2 + $0x184] ss:$8 sps:$4 sm:$0xff]   ;;  %v3811_v61 = vld [vmem:[#allocation2 + $0x180] ss:$8 sps:$4 sm:$0xff]  }
 0x127   : > { %1604 = vmatmul.mubr.bf16.vlgmr.msra.gmra.mrb[8].mxu1 %v1169_v9  ;;  %v4507_v14 = vadd.f32 %v1158_v13, %v1026_v63  ;;  %v1160_v16 = vpop.f32.mrb[5].mxu1  ;;  %961 = vmatpush1.bf16.msra.mxu0 %v3763_v3  ;;  %v511_v20 = vadd.f32 %v510_v15, %v372_v5  ;;  %v512_v22 = vpop.f32.mrb[6].mxu0  ;;  %v3816_v60 = vld [vmem:[#allocation2 + $0x384] ss:$8 sps:$4 sm:$0xff]   ;;  %v3814_v62 = vld [vmem:[#allocation2 + $0x380] ss:$8 sps:$4 sm:$0xff]  }
 0x128   : > { %1613 = vmatpush1.bf16.msra.mxu1 %v3766_v4  ;;  %v1161_v21 = vadd.f32 %v1160_v16, %v1030_v6  ;;  %v1162_v23 = vpop.f32.mrb[6].mxu1  ;;  %962 = vmatprep.subr.bf16.mxu0 %v3771_v10  ;;  %v513_v26 = vpop.f32.mrb[7].mxu0  ;;  %v3819_v63 = vld [vmem:[#allocation2 + $0x194] ss:$8 sps:$4 sm:$0xff]   ;;  %v3817_v2 = vld [vmem:[#allocation2 + $0x190] ss:$8 sps:$4 sm:$0xff]  }
 0x129   : > { %1614 = vmatprep.subr.bf16.mxu1 %v3774_v11  ;;  %v1163_v27 = vpop.f32.mrb[7].mxu1  ;;  %v518_v28 = vmax.f32 %v511_v20, 0.0  ;;  %v3822_v1 = vld [vmem:[#allocation2 + $0x394] ss:$8 sps:$4 sm:$0xff]   ;;  %v3820_v3 = vld [vmem:[#allocation2 + $0x390] ss:$8 sps:$4 sm:$0xff]  }
 0x12a   : > { %v1168_v29 = vmax.f32 %v1161_v21, 0.0  ;;  %v3825_v4 = vld [vmem:[#allocation2 + $0x1a4] ss:$8 sps:$4 sm:$0xff]   ;;  %v3823_v6 = vld [vmem:[#allocation2 + $0x1a0] ss:$8 sps:$4 sm:$0xff]  }
 0x12b   : > { %963 = vmatpush1.bf16.msra.mxu0 %v3769_v17  ;;  %v522_v32 = vpack.c.bf16 %v518_v28, %v518_v28  ;;  %v3828_v5 = vld [vmem:[#allocation2 + $0x3a4] ss:$8 sps:$4 sm:$0xff]   ;;  %v3826_v8 = vld [vmem:[#allocation2 + $0x3a0] ss:$8 sps:$4 sm:$0xff]   ;;  %v3831_v9 = vld [vmem:[#allocation2 + $0x1b4] ss:$8 sps:$4 sm:$0xff]  }
 0x12c   : > { %1615 = vmatpush1.bf16.msra.mxu1 %v3772_v18  ;;  %v1172_v33 = vpack.c.bf16 %v1168_v29, %v1168_v29  ;;  %964 = vmatprep.subr.bf16.mxu0 %v3777_v24  ;;  %v3834_v10 = vld [vmem:[#allocation2 + $0x3b4] ss:$8 sps:$4 sm:$0xff]   ;;  %v3829_v11 = vld [vmem:[#allocation2 + $0x1b0] ss:$8 sps:$4 sm:$0xff]   ;;  %v3837_v15 = vld [vmem:[#allocation2 + $0x1c4] ss:$8 sps:$4 sm:$0xff]   ;;  %v368_v24 = vrot.slane %v4484_v38, %v4497_v51 }
 0x12d   : > { %1616 = vmatprep.subr.bf16.mxu1 %v3780_v25  ;;  %992 = vmatprep.mubr.bf16.mxu0 %v522_v32  ;;  %v3832_v13 = vld [vmem:[#allocation2 + $0x3b0] ss:$8 sps:$4 sm:$0xff]   ;;  %v3840_v16 = vld [vmem:[#allocation2 + $0x3c4] ss:$8 sps:$4 sm:$0xff]   ;;  %v3835_v17 = vld [vmem:[#allocation2 + $0x1c0] ss:$8 sps:$4 sm:$0xff]  }
 0x12e   : > { %1644 = vmatprep.mubr.bf16.mxu1 %v1172_v33  ;;  %v3838_v18 = vld [vmem:[#allocation2 + $0x3c0] ss:$8 sps:$4 sm:$0xff]   ;;  %v3843_v20 = vld [vmem:[#allocation2 + $0x1d4] ss:$8 sps:$4 sm:$0xff]   ;;  %v3841_v22 = vld [vmem:[#allocation2 + $0x1d0] ss:$8 sps:$4 sm:$0xff]   ;;  %v509_v29 = vadd.f32 %v4505_v12, %v368_v24 }
 0x12f   : > { %965 = vmatpush1.bf16.msra.mxu0 %v3775_v30  ;;  %v3846_v21 = vld [vmem:[#allocation2 + $0x3d4] ss:$8 sps:$4 sm:$0xff]   ;;  %v3844_v23 = vld [vmem:[#allocation2 + $0x3d0] ss:$8 sps:$4 sm:$0xff]   ;;  %v3849_v25 = vld [vmem:[#allocation2 + $0x1e4] ss:$8 sps:$4 sm:$0xff]  }
 0x130   : > { %1617 = vmatpush1.bf16.msra.mxu1 %v3778_v31  ;;  %966 = vmatprep.subr.bf16.mxu0 %v3783_v34  ;;  %v3852_v26 = vld [vmem:[#allocation2 + $0x3e4] ss:$8 sps:$4 sm:$0xff]   ;;  %v3847_v27 = vld [vmem:[#allocation2 + $0x1e0] ss:$8 sps:$4 sm:$0xff]   ;;  %v3855_v30 = vld [vmem:[#allocation2 + $0x1f4] ss:$8 sps:$4 sm:$0xff]  }
 0x131   : > { %1618 = vmatprep.subr.bf16.mxu1 %v3786_v35  ;;  %v3850_v28 = vld [vmem:[#allocation2 + $0x3e0] ss:$8 sps:$4 sm:$0xff]   ;;  %v3858_v31 = vld [vmem:[#allocation2 + $0x3f4] ss:$8 sps:$4 sm:$0xff]   ;;  %v3853_v32 = vld [vmem:[#allocation2 + $0x1f0] ss:$8 sps:$4 sm:$0xff]  }
 0x132   : > { %v3856_v33 = vld [vmem:[#allocation2 + $0x3f0] ss:$8 sps:$4 sm:$0xff]   ;;  %v3861_v34 = vld [vmem:[%s4802_s1 + $0x84] ss:$16 sps:$4 sm:$0xff]   ;;  %v517_v35 = vmax.f32 %v509_v29, 0.0 }
 0x133   : > { %967 = vmatpush1.bf16.msra.mxu0 %v3781_v36  ;;  %v3864_v38 = vld [vmem:[%s4802_s1 + $0xc4] ss:$16 sps:$4 sm:$0xff]   ;;  %v1167_v36 = vmax.f32 %v4507_v14, 0.0  ;;  %v3865_v14 = vld [vmem:[%s4802_s1 + $0xa0] ss:$16 sps:$4 sm:$0x3f]  }
 0x134   : > { %1619 = vmatpush1.bf16.msra.mxu1 %v3784_v39  ;;  %968 = vmatprep.subr.bf16.mxu0 %v3789_v41  ;;  %v3867_v12 = vld [vmem:[%s4802_s1 + $0xa4] ss:$16 sps:$4 sm:$0x3f]   ;;  %v3859_v41 = vld [vmem:[%s4802_s1 + $0x80] ss:$16 sps:$4 sm:$0xff]  }
 0x135   : > { %1620 = vmatprep.subr.bf16.mxu1 %v3792_v42  ;;  %v3870_v39 = vld [vmem:[%s4802_s1 + $0xe4] ss:$16 sps:$4 sm:$0x3f]   ;;  %v3862_v42 = vld [vmem:[%s4802_s1 + $0xc0] ss:$16 sps:$4 sm:$0xff]  }
 0x136   : > { %v3913_v24 = vld [vmem:[#allocation2 + $0x450] ss:$8 sps:$4 sm:$0xff]   ;;  %v3922_v29 = vld [vmem:[#allocation2 + $0x660] ss:$8 sps:$4 sm:$0xff]  }
 0x137   : > { %969 = vmatpush1.bf16.msra.mxu0 %v3787_v43  ;;  %v1727_v43 = vand.u32 %v3867_v12, %v4421_v7  ;;  %v3931_v12 = vld [vmem:[#allocation2 + $0x480] ss:$8 sps:$4 sm:$0xff]  }
 0x138   : > { %1621 = vmatpush1.bf16.msra.mxu1 %v3790_v44  ;;  %970 = vmatprep.subr.bf16.mxu0 %v3795_v45  ;;  %v3868_v44 = vld [vmem:[%s4802_s1 + $0xe0] ss:$16 sps:$4 sm:$0x3f]   ;;  %v521_v45 = vpack.c.bf16 %v517_v35, %v517_v35 }
 0x139   : > { %1622 = vmatprep.subr.bf16.mxu1 %v3798_v46  ;;  %v1171_v46 = vpack.c.bf16 %v1167_v36, %v1167_v36  ;;  %v3934_v35 = vld [vmem:[#allocation2 + $0x680] ss:$8 sps:$4 sm:$0xff]   ;;  %v3939_v36 = vld [vmem:[#allocation2 + $0x494] ss:$8 sps:$4 sm:$0xff]  }
 0x13b   : > { %971 = vmatpush1.bf16.msra.mxu0 %v3793_v47  ;;  %v2379_v47 = vand.u32 %v3870_v39, %v4421_v7  ;;  %v3942_v39 = vld [vmem:[#allocation2 + $0x694] ss:$8 sps:$4 sm:$0xff]  }
 0x13c   : > { %1623 = vmatpush1.bf16.msra.mxu1 %v3796_v48  ;;  %972 = vmatprep.subr.bf16.mxu0 %v3801_v49  ;;  %v1724_v48 = vand.u32 %v3865_v14, %v4421_v7  ;;  %v2376_v49 = vand.u32 %v3868_v44, %v4421_v7  ;;  %v3945_v14 = vld [vmem:[#allocation2 + $0x4a4] ss:$8 sps:$4 sm:$0xff]   ;;  %v3943_v44 = vld [vmem:[#allocation2 + $0x4a0] ss:$8 sps:$4 sm:$0xff]  }
 0x13d   : > { %1624 = vmatprep.subr.bf16.mxu1 %v3804_v50  ;;  %v3873_v50 = vld [vmem:[%s4802_s1 + $0x8c] ss:$16 sps:$4 sm:$0xff]  }
 0x13f   : > { %973 = vmatpush1.bf16.msra.mxu0 %v3799_v52  ;;  %v3876_v52 = vld [vmem:[%s4802_s1 + $0xcc] ss:$16 sps:$4 sm:$0xff]  }
 0x140   : > { %1625 = vmatpush1.bf16.msra.mxu1 %v3802_v53  ;;  %974 = vmatprep.subr.bf16.mxu0 %v3807_v54  ;;  %v3879_v53 = vld [vmem:[%s4802_s1 + $0xac] ss:$16 sps:$4 sm:$0x3f]  }
 0x141   : > { %1626 = vmatprep.subr.bf16.mxu1 %v3810_v55  ;;  %v3882_v54 = vld [vmem:[%s4802_s1 + $0xec] ss:$16 sps:$4 sm:$0x3f]   ;;  %v3871_v55 = vld [vmem:[%s4802_s1 + $0x88] ss:$16 sps:$4 sm:$0xff]  }
 0x143   : > { %975 = vmatpush1.bf16.msra.mxu0 %v3805_v57  ;;  %v3874_v57 = vld [vmem:[%s4802_s1 + $0xc8] ss:$16 sps:$4 sm:$0xff]  }
 0x144   : > { %1627 = vmatpush1.bf16.msra.mxu1 %v3808_v58  ;;  %976 = vmatprep.subr.bf16.mxu0 %v3813_v59  ;;  %v3877_v58 = vld [vmem:[%s4802_s1 + $0xa8] ss:$16 sps:$4 sm:$0x3f]  }
 0x145   : > { %1628 = vmatprep.subr.bf16.mxu1 %v3816_v60  ;;  %v3880_v59 = vld [vmem:[%s4802_s1 + $0xe8] ss:$16 sps:$4 sm:$0x3f]   ;;  %v1733_v60 = vand.u32 %v3879_v53, %v4421_v7 }
 0x146   : > { %v3955_v53 = vld [vmem:[#allocation2 + $0x4c0] ss:$8 sps:$4 sm:$0xff]  }
 0x147   : > { %977 = vmatpush1.bf16.msra.mxu0 %v3811_v61  ;;  %v2385_v61 = vand.u32 %v3882_v54, %v4421_v7  ;;  %v3958_v54 = vld [vmem:[#allocation2 + $0x6c0] ss:$8 sps:$4 sm:$0xff]  }
 0x148   : > { %1629 = vmatpush1.bf16.msra.mxu1 %v3814_v62  ;;  %978 = vmatprep.subr.bf16.mxu0 %v3819_v63  ;;  %v1730_v62 = vand.u32 %v3877_v58, %v4421_v7  ;;  %v2382_v63 = vand.u32 %v3880_v59, %v4421_v7  ;;  %v3889_v7 = vld [vmem:[#allocation2 + $0x410] ss:$8 sps:$4 sm:$0xff]  }
 0x149   : > { %1630 = vmatprep.subr.bf16.mxu1 %v3822_v1  ;;  %v3885_v1 = vld [vmem:[#allocation2 + $0x404] ss:$8 sps:$4 sm:$0xff]   ;;  %v3961_v58 = vld [vmem:[#allocation2 + $0x4d0] ss:$8 sps:$4 sm:$0xff]  }
 0x14a   : > { %v3964_v59 = vld [vmem:[#allocation2 + $0x6d0] ss:$8 sps:$4 sm:$0xff]  }
 0x14b   : > { %979 = vmatpush1.bf16.msra.mxu0 %v3817_v2  ;;  %v3888_v2 = vld [vmem:[#allocation2 + $0x604] ss:$8 sps:$4 sm:$0xff]  }
 0x14c   : > { %1631 = vmatpush1.bf16.msra.mxu1 %v3820_v3  ;;  %980 = vmatprep.subr.bf16.mxu0 %v3825_v4  ;;  %v3883_v3 = vld [vmem:[#allocation2 + $0x400] ss:$8 sps:$4 sm:$0xff]  }
 0x14d   : > { %1632 = vmatprep.subr.bf16.mxu1 %v3828_v5  ;;  %v3886_v4 = vld [vmem:[#allocation2 + $0x600] ss:$8 sps:$4 sm:$0xff]   ;;  %v3891_v5 = vld [vmem:[#allocation2 + $0x414] ss:$8 sps:$4 sm:$0xff]  }
 0x14f   : > { %981 = vmatpush1.bf16.msra.mxu0 %v3823_v6  ;;  %v3894_v6 = vld [vmem:[#allocation2 + $0x614] ss:$8 sps:$4 sm:$0xff]  }
 0x150   : > { %1633 = vmatpush1.bf16.msra.mxu1 %v3826_v8  ;;  %982 = vmatprep.subr.bf16.mxu0 %v3831_v9  ;;  %v3892_v8 = vld [vmem:[#allocation2 + $0x610] ss:$8 sps:$4 sm:$0xff]   ;;  %v3900_v9 = vld [vmem:[#allocation2 + $0x624] ss:$8 sps:$4 sm:$0xff]  }
 0x151   : > { %1634 = vmatprep.subr.bf16.mxu1 %v3834_v10  ;;  %v3895_v10 = vld [vmem:[#allocation2 + $0x420] ss:$8 sps:$4 sm:$0xff]  }
 0x153   : > { %983 = vmatpush1.bf16.msra.mxu0 %v3829_v11  ;;  %v3898_v11 = vld [vmem:[#allocation2 + $0x620] ss:$8 sps:$4 sm:$0xff]  }
 0x154   : > { %1635 = vmatpush1.bf16.msra.mxu1 %v3832_v13  ;;  %984 = vmatprep.subr.bf16.mxu0 %v3837_v15  ;;  %v3903_v13 = vld [vmem:[#allocation2 + $0x434] ss:$8 sps:$4 sm:$0xff]  }
 0x155   : > { %1636 = vmatprep.subr.bf16.mxu1 %v3840_v16  ;;  %v3906_v15 = vld [vmem:[#allocation2 + $0x634] ss:$8 sps:$4 sm:$0xff]   ;;  %v3901_v16 = vld [vmem:[#allocation2 + $0x430] ss:$8 sps:$4 sm:$0xff]  }
 0x157   : > { %985 = vmatpush1.bf16.msra.mxu0 %v3835_v17  ;;  %v3909_v17 = vld [vmem:[#allocation2 + $0x444] ss:$8 sps:$4 sm:$0xff]  }
 0x158   : > { %1637 = vmatpush1.bf16.msra.mxu1 %v3838_v18  ;;  %986 = vmatprep.subr.bf16.mxu0 %v3843_v20  ;;  %v3912_v18 = vld [vmem:[#allocation2 + $0x644] ss:$8 sps:$4 sm:$0xff]   ;;  %v3907_v20 = vld [vmem:[#allocation2 + $0x440] ss:$8 sps:$4 sm:$0xff]  }
 0x159   : > { %1638 = vmatprep.subr.bf16.mxu1 %v3846_v21  ;;  %v3910_v21 = vld [vmem:[#allocation2 + $0x640] ss:$8 sps:$4 sm:$0xff]  }
 0x15b   : > { %987 = vmatpush1.bf16.msra.mxu0 %v3841_v22  ;;  %v3915_v22 = vld [vmem:[#allocation2 + $0x454] ss:$8 sps:$4 sm:$0xff]  }
 0x15c   : > { %1639 = vmatpush1.bf16.msra.mxu1 %v3844_v23  ;;  %988 = vmatprep.subr.bf16.mxu0 %v3849_v25  ;;  %v3918_v23 = vld [vmem:[#allocation2 + $0x654] ss:$8 sps:$4 sm:$0xff]   ;;  %v3916_v25 = vld [vmem:[#allocation2 + $0x650] ss:$8 sps:$4 sm:$0xff]  }
 0x15d   : > { %1640 = vmatprep.subr.bf16.mxu1 %v3852_v26  ;;  %v3921_v26 = vld [vmem:[#allocation2 + $0x464] ss:$8 sps:$4 sm:$0xff]  }
 0x15f   : > { %989 = vmatpush1.bf16.msra.mxu0 %v3847_v27  ;;  %v3924_v27 = vld [vmem:[#allocation2 + $0x664] ss:$8 sps:$4 sm:$0xff]  }
 0x160   : > { %1641 = vmatpush1.bf16.msra.mxu1 %v3850_v28  ;;  %990 = vmatprep.subr.bf16.mxu0 %v3855_v30  ;;  %v3919_v28 = vld [vmem:[#allocation2 + $0x460] ss:$8 sps:$4 sm:$0xff]   ;;  %v3927_v30 = vld [vmem:[#allocation2 + $0x474] ss:$8 sps:$4 sm:$0xff]  }
 0x161   : > { %1642 = vmatprep.subr.bf16.mxu1 %v3858_v31  ;;  %v3930_v31 = vld [vmem:[#allocation2 + $0x674] ss:$8 sps:$4 sm:$0xff]  }
 0x163   : > { %991 = vmatpush1.bf16.msra.mxu0 %v3853_v32  ;;  %v3925_v32 = vld [vmem:[#allocation2 + $0x470] ss:$8 sps:$4 sm:$0xff]  }
 0x164   : > { %1643 = vmatpush1.bf16.msra.mxu1 %v3856_v33  ;;  %1735 = vmatprep.subr.bf16.mxu0 %v3861_v34  ;;  %v3928_v33 = vld [vmem:[#allocation2 + $0x670] ss:$8 sps:$4 sm:$0xff]   ;;  %v3933_v34 = vld [vmem:[#allocation2 + $0x484] ss:$8 sps:$4 sm:$0xff]  }
 0x165   : > { %2387 = vmatprep.subr.bf16.mxu1 %v3864_v38  ;;  %v3936_v38 = vld [vmem:[#allocation2 + $0x684] ss:$8 sps:$4 sm:$0xff]  }
 0x166   : > { %993 = vmatmul.mubr.bf16.vlgmr.msra.gmra.mrb[8].mxu0 %v521_v45  ;;  %v3946_v45 = vld [vmem:[#allocation2 + $0x6a0] ss:$8 sps:$4 sm:$0xff]  }
 0x167   : > { %1645 = vmatmul.mubr.bf16.vlgmr.msra.gmra.mrb[8].mxu1 %v1171_v46  ;;  %1736 = vmatpush1.bf16.msra.mxu0 %v3859_v41  ;;  %v3937_v41 = vld [vmem:[#allocation2 + $0x490] ss:$8 sps:$4 sm:$0xff]   ;;  %v3951_v46 = vld [vmem:[#allocation2 + $0x4b4] ss:$8 sps:$4 sm:$0xff]  }
 0x168   : > { %2388 = vmatpush1.bf16.msra.mxu1 %v3862_v42  ;;  %1737 = vmatprep.subr.bf16.mxu0 %v1727_v43  ;;  %v3940_v42 = vld [vmem:[#allocation2 + $0x690] ss:$8 sps:$4 sm:$0xff]   ;;  %v3948_v43 = vld [vmem:[#allocation2 + $0x6a4] ss:$8 sps:$4 sm:$0xff]  }
 0x169   : > { %2389 = vmatprep.subr.bf16.mxu1 %v2379_v47  ;;  %1767 = vmatprep.mubr.bf16.mxu0 %v4266_v0  ;;  %v3954_v47 = vld [vmem:[#allocation2 + $0x6b4] ss:$8 sps:$4 sm:$0xff]  }
 0x16a   : > { %2419 = vmatprep.mubr.bf16.mxu1 %v4266_v0 }
 0x16b   : > { %1738 = vmatpush1.bf16.msra.mxu0 %v1724_v48  ;;  %v3949_v48 = vld [vmem:[#allocation2 + $0x4b0] ss:$8 sps:$4 sm:$0xff]  }
 0x16c   : > { %2390 = vmatpush1.bf16.msra.mxu1 %v2376_v49  ;;  %1776 = vmatprep.subr.bf16.mxu0 %v3873_v50  ;;  %v3952_v49 = vld [vmem:[#allocation2 + $0x6b0] ss:$8 sps:$4 sm:$0xff]   ;;  %v3957_v50 = vld [vmem:[#allocation2 + $0x4c4] ss:$8 sps:$4 sm:$0xff]  }
 0x16d   : > { %2428 = vmatprep.subr.bf16.mxu1 %v3876_v52  ;;  %v3960_v52 = vld [vmem:[#allocation2 + $0x6c4] ss:$8 sps:$4 sm:$0xff]  }
 0x16e   : > { %3381 = vmatmul.mubr.msk.bf16.vlgmr.msra.gmra.mrb[12].mxu0 %vm413_vm2, %v4445_v19 }
 0x16f   : > { %3465 = vmatmul.mubr.msk.bf16.vlgmr.msra.gmra.mrb[12].mxu1 %vm413_vm2, %v4445_v19  ;;  %1777 = vmatpush1.bf16.msra.mxu0 %v3871_v55  ;;  %v3963_v55 = vld [vmem:[#allocation2 + $0x4d4] ss:$8 sps:$4 sm:$0xff]  }
 0x170   : > { %2429 = vmatpush1.bf16.msra.mxu1 %v3874_v57  ;;  %1778 = vmatprep.subr.bf16.mxu0 %v1733_v60  ;;  %v3966_v57 = vld [vmem:[#allocation2 + $0x6d4] ss:$8 sps:$4 sm:$0xff]   ;;  %v3969_v60 = vld [vmem:[#allocation2 + $0x4e4] ss:$8 sps:$4 sm:$0xff]  }
 0x171   : > { %2430 = vmatprep.subr.bf16.mxu1 %v2385_v61  ;;  %1808 = vmatprep.mubr.bf16.mxu0 %v4266_v0  ;;  %v3972_v61 = vld [vmem:[#allocation2 + $0x6e4] ss:$8 sps:$4 sm:$0xff]  }
 0x172   : > { %2460 = vmatprep.mubr.bf16.mxu1 %v4266_v0  ;;  %v3897_v0 = vld [vmem:[#allocation2 + $0x424] ss:$8 sps:$4 sm:$0xff]  }
 0x173   : > { %1779 = vmatpush1.bf16.msra.mxu0 %v1730_v62  ;;  %v3967_v62 = vld [vmem:[#allocation2 + $0x4e0] ss:$8 sps:$4 sm:$0xff]  }
 0x174   : > { %2431 = vmatpush1.bf16.msra.mxu1 %v2382_v63  ;;  %2223 = vmatprep.subr.bf16.mxu0 %v3885_v1  ;;  %v3970_v63 = vld [vmem:[#allocation2 + $0x6e0] ss:$8 sps:$4 sm:$0xff]   ;;  %v3975_v1 = vld [vmem:[#allocation2 + $0x4f4] ss:$8 sps:$4 sm:$0xff]  }
 0x175   : > { %2875 = vmatprep.subr.bf16.mxu1 %v3888_v2  ;;  %v3978_v2 = vld [vmem:[#allocation2 + $0x6f4] ss:$8 sps:$4 sm:$0xff]  }
 0x176   : > { %3382 = vmatmul.mubr.msk.bf16.vlgmr.msra.gmra.mrb[16].mxu0 %vm413_vm2, %v4445_v19 }
 0x177   : > { %3466 = vmatmul.mubr.msk.bf16.vlgmr.msra.gmra.mrb[16].mxu1 %vm413_vm2, %v4445_v19  ;;  %2224 = vmatpush1.bf16.msra.mxu0 %v3883_v3  ;;  %v3904_v19 = vld [vmem:[#allocation2 + $0x630] ss:$8 sps:$4 sm:$0xff]  }
 0x178   : > { %2876 = vmatpush1.bf16.msra.mxu1 %v3886_v4  ;;  %2225 = vmatprep.subr.bf16.mxu0 %v3891_v5  ;;  %v3973_v3 = vld [vmem:[#allocation2 + $0x4f0] ss:$8 sps:$4 sm:$0xff]   ;;  %v3981_v5 = vld [vmem:[#allocation2 + $0x504] ss:$8 sps:$4 sm:$0xff]  }
 0x179   : > { %2877 = vmatprep.subr.bf16.mxu1 %v3894_v6  ;;  %v3976_v4 = vld [vmem:[#allocation2 + $0x6f0] ss:$8 sps:$4 sm:$0xff]   ;;  %v3984_v6 = vld [vmem:[#allocation2 + $0x704] ss:$8 sps:$4 sm:$0xff]  }
 0x17b   : > { %2226 = vmatpush1.bf16.msra.mxu0 %v3889_v7  ;;  %v587_v7 = vld [vmem:[%s4784_s4] sm:$0x3] }
 0x17c   : > { %2878 = vmatpush1.bf16.msra.mxu1 %v3892_v8  ;;  %2227 = vmatprep.subr.bf16.mxu0 %v3897_v0  ;;  %v3299_v8 = vld [vmem:[%s4784_s4 + $0x2] sm:$0x3]  ;;  %v592_v0 = vrot.slane %v587_v7, %v4479_v37 }
 0x17d   : > { %2879 = vmatprep.subr.bf16.mxu1 %v3900_v9  ;;  %v1244_v9 = vrot.slane %v3299_v8, %v4479_v37 }
 0x17f   : > { %2228 = vmatpush1.bf16.msra.mxu0 %v3895_v10  ;;  %v596_v10 = vrot.slane %v587_v7, %v4489_v40 }
 0x180   : > { %2880 = vmatpush1.bf16.msra.mxu1 %v3898_v11  ;;  %2229 = vmatprep.subr.bf16.mxu0 %v3903_v13  ;;  %v1248_v11 = vrot.slane %v3299_v8, %v4489_v40  ;;  %v3993_v8 = vld [vmem:[#allocation2 + $0x524] ss:$8 sps:$4 sm:$0xff]  }
 0x181   : > { %2881 = vmatprep.subr.bf16.mxu1 %v3906_v15 }
 0x183   : > { %2230 = vmatpush1.bf16.msra.mxu0 %v3901_v16 }
 0x184   : > { %2882 = vmatpush1.bf16.msra.mxu1 %v3904_v19  ;;  %2231 = vmatprep.subr.bf16.mxu0 %v3909_v17 }
 0x185   : > { %2883 = vmatprep.subr.bf16.mxu1 %v3912_v18 }
 0x187   : > { %2232 = vmatpush1.bf16.msra.mxu0 %v3907_v20 }
 0x188   : > { %2884 = vmatpush1.bf16.msra.mxu1 %v3910_v21  ;;  %2233 = vmatprep.subr.bf16.mxu0 %v3915_v22 }
 0x189   : > { %2885 = vmatprep.subr.bf16.mxu1 %v3918_v23 }
 0x18b   : > { %2234 = vmatpush1.bf16.msra.mxu0 %v3913_v24  ;;  %v4600_v24 = vld [vmem:[%s4782_s2 + $0x8] sm:$0xf] }
 0x18c   : > { %2886 = vmatpush1.bf16.msra.mxu1 %v3916_v25  ;;  %2235 = vmatprep.subr.bf16.mxu0 %v3921_v26  ;;  %v3456_v25 = vld [vmem:[%s4782_s2 + $0xc] sm:$0xf] }
 0x18d   : > { %2887 = vmatprep.subr.bf16.mxu1 %v3924_v27 }
 0x18f   : > { %2236 = vmatpush1.bf16.msra.mxu0 %v3919_v28  ;;  %v1670_v28 = vrot.slane %v4600_v24, %v4479_v37 }
 0x190   : > { %2888 = vmatpush1.bf16.msra.mxu1 %v3922_v29  ;;  %2237 = vmatprep.subr.bf16.mxu0 %v3927_v30  ;;  %v2322_v29 = vrot.slane %v3456_v25, %v4479_v37  ;;  %v1674_v30 = vrot.slane %v4600_v24, %v4489_v40 }
 0x191   : > { %2889 = vmatprep.subr.bf16.mxu1 %v3930_v31  ;;  %v2326_v31 = vrot.slane %v3456_v25, %v4489_v40 }
 0x193   : > { %2238 = vmatpush1.bf16.msra.mxu0 %v3925_v32 }
 0x194   : > { %2890 = vmatpush1.bf16.msra.mxu1 %v3928_v33  ;;  %2239 = vmatprep.subr.bf16.mxu0 %v3933_v34 }
 0x195   : > { %2891 = vmatprep.subr.bf16.mxu1 %v3936_v38 }
 0x197   : > { %2240 = vmatpush1.bf16.msra.mxu0 %v3931_v12 }
 0x198   : > { %2892 = vmatpush1.bf16.msra.mxu1 %v3934_v35  ;;  %2241 = vmatprep.subr.bf16.mxu0 %v3939_v36 }
 0x199   : > { %2893 = vmatprep.subr.bf16.mxu1 %v3942_v39 }
 0x19b   : > { %2242 = vmatpush1.bf16.msra.mxu0 %v3937_v41 }
 0x19c   : > { %2894 = vmatpush1.bf16.msra.mxu1 %v3940_v42  ;;  %2243 = vmatprep.subr.bf16.mxu0 %v3945_v14 }
 0x19d   : > { %2895 = vmatprep.subr.bf16.mxu1 %v3948_v43 }
 0x19f   : > { %2244 = vmatpush1.bf16.msra.mxu0 %v3943_v44 }
 0x1a0   : > { %2896 = vmatpush1.bf16.msra.mxu1 %v3946_v45  ;;  %2245 = vmatprep.subr.bf16.mxu0 %v3951_v46 }
 0x1a1   : > { %2897 = vmatprep.subr.bf16.mxu1 %v3954_v47 }
 0x1a3   : > { %2246 = vmatpush1.bf16.msra.mxu0 %v3949_v48  ;;  %v2330_v48 = vrot.slane %v3456_v25, %v4497_v51 }
 0x1a4   : > { %2898 = vmatpush1.bf16.msra.mxu1 %v3952_v49  ;;  %2247 = vmatprep.subr.bf16.mxu0 %v3957_v50 }
 0x1a5   : > { %2899 = vmatprep.subr.bf16.mxu1 %v3960_v52  ;;  %v3979_v52 = vld [vmem:[#allocation2 + $0x500] ss:$8 sps:$4 sm:$0xff]  }
 0x1a7   : > { %2248 = vmatpush1.bf16.msra.mxu0 %v3955_v53  ;;  %v3982_v53 = vld [vmem:[#allocation2 + $0x700] ss:$8 sps:$4 sm:$0xff]  }
 0x1a8   : > { %2900 = vmatpush1.bf16.msra.mxu1 %v3958_v54  ;;  %2249 = vmatprep.subr.bf16.mxu0 %v3963_v55  ;;  %v1682_v54 = vrot.slane %v4600_v24, %v4499_v56  ;;  %v2334_v55 = vrot.slane %v3456_v25, %v4499_v56  ;;  %v4008_v25 = vld [vmem:[#allocation2 + $0x744] ss:$8 sps:$4 sm:$0xff]  }
 0x1a9   : > { %2901 = vmatprep.subr.bf16.mxu1 %v3966_v57 }
 0x1ab   : > { %2250 = vmatpush1.bf16.msra.mxu0 %v3961_v58 }
 0x1ac   : > { %2902 = vmatpush1.bf16.msra.mxu1 %v3964_v59  ;;  %2251 = vmatprep.subr.bf16.mxu0 %v3969_v60  ;;  %v3987_v59 = vld [vmem:[#allocation2 + $0x514] ss:$8 sps:$4 sm:$0xff]  }
 0x1ad   : > { %2903 = vmatprep.subr.bf16.mxu1 %v3972_v61  ;;  %v3990_v60 = vld [vmem:[#allocation2 + $0x714] ss:$8 sps:$4 sm:$0xff]  }
 0x1af   : > { %2252 = vmatpush1.bf16.msra.mxu0 %v3967_v62 }
 0x1b0   : > { %2904 = vmatpush1.bf16.msra.mxu1 %v3970_v63  ;;  %2253 = vmatprep.subr.bf16.mxu0 %v3975_v1 }
 0x1b1   : > { %2905 = vmatprep.subr.bf16.mxu1 %v3978_v2 }
 0x1b3   : > { %2254 = vmatpush1.bf16.msra.mxu0 %v3973_v3  ;;  %v3985_v3 = vld [vmem:[#allocation2 + $0x510] ss:$8 sps:$4 sm:$0xff]  }
 0x1b4   : > { %2906 = vmatpush1.bf16.msra.mxu1 %v3976_v4  ;;  %2264 = vmatprep.subr.bf16.mxu0 %v3981_v5  ;;  %v3988_v4 = vld [vmem:[#allocation2 + $0x710] ss:$8 sps:$4 sm:$0xff]  }
 0x1b5   : > { %2916 = vmatprep.subr.bf16.mxu1 %v3984_v6 }
 0x239   : > { %v994_v13 = vpop.f32.mrb[8].mxu0 }
 0x23a   : > { %v1646_v15 = vpop.f32.mrb[8].mxu1  ;;  %v3550_v16 = vadd.f32 %v994_v13, %v592_v0  ;;  %v996_v17 = vpop.f32.mrb[9].mxu0  ;;  %v3996_v0 = vld [vmem:[#allocation2 + $0x724] ss:$8 sps:$4 sm:$0xff]  }
 0x23b   : > { %v3552_v19 = vadd.f32 %v1646_v15, %v1244_v9  ;;  %v1648_v18 = vpop.f32.mrb[9].mxu1  ;;  %v3551_v20 = vadd.f32 %v996_v17, %v596_v10  ;;  %v998_v22 = vpop.f32.mrb[10].mxu0  ;;  %v3991_v15 = vld [vmem:[#allocation2 + $0x520] ss:$8 sps:$4 sm:$0xff]  }
 0x23c   : > { %v3553_v21 = vadd.f32 %v1648_v18, %v1248_v11  ;;  %v1650_v23 = vpop.f32.mrb[10].mxu1  ;;  %1001 = vst [vmem:[%s4606_s18] sm:$0xff] %v3550_v16  ;;  %v999_v26 = vpop.f32.mrb[11].mxu0  ;;  %v3994_v16 = vld [vmem:[#allocation2 + $0x720] ss:$8 sps:$4 sm:$0xff]   ;;  %v3999_v18 = vld [vmem:[#allocation2 + $0x534] ss:$8 sps:$4 sm:$0xff]  }
 0x23d   : > { %1653 = vst [vmem:[%s4610_s20] sm:$0xff] %v3552_v19  ;;  %v1651_v27 = vpop.f32.mrb[11].mxu1  ;;  %1002 = vst [vmem:[%s4606_s18 + $0x8] sm:$0xff] %v3551_v20  ;;  %v4002_v20 = vld [vmem:[#allocation2 + $0x734] ss:$8 sps:$4 sm:$0xff]   ;;  %v4000_v22 = vld [vmem:[#allocation2 + $0x730] ss:$8 sps:$4 sm:$0xff]  }
 0x23e   : > { %1654 = vst [vmem:[%s4610_s20 + $0x8] sm:$0xff] %v3553_v21  ;;  %v3997_v21 = vld [vmem:[#allocation2 + $0x530] ss:$8 sps:$4 sm:$0xff]   ;;  %v4005_v23 = vld [vmem:[#allocation2 + $0x544] ss:$8 sps:$4 sm:$0xff]  }
 0x23f   : > { %v4003_v26 = vld [vmem:[#allocation2 + $0x540] ss:$8 sps:$4 sm:$0xff]  }
 0x240   : > { %v4006_v27 = vld [vmem:[#allocation2 + $0x740] ss:$8 sps:$4 sm:$0xff]  }
 0x241   : > { %v1769_v32 = vpop.f32.mrb[12].mxu0 }
 0x242   : > { %v2421_v33 = vpop.f32.mrb[12].mxu1  ;;  %v1770_v34 = vadd.f32 %v1769_v32, %v1670_v28  ;;  %v1771_v12 = vpop.f32.mrb[13].mxu0  ;;  %v4011_v28 = vld [vmem:[#allocation2 + $0x554] ss:$8 sps:$4 sm:$0xff]   ;;  %v4017_v32 = vld [vmem:[#allocation2 + $0x564] ss:$8 sps:$4 sm:$0xff]  }
 0x243   : > { %v2422_v38 = vadd.f32 %v2421_v33, %v2322_v29  ;;  %v2423_v35 = vpop.f32.mrb[13].mxu1  ;;  %v1772_v36 = vadd.f32 %v1771_v12, %v1674_v30  ;;  %v1773_v41 = vpop.f32.mrb[14].mxu0  ;;  %v4014_v29 = vld [vmem:[#allocation2 + $0x754] ss:$8 sps:$4 sm:$0xff]   ;;  %v4009_v30 = vld [vmem:[#allocation2 + $0x550] ss:$8 sps:$4 sm:$0xff]  }
 0x244   : > { %v2424_v39 = vadd.f32 %v2423_v35, %v2326_v31  ;;  %v2425_v42 = vpop.f32.mrb[14].mxu1  ;;  %v1817_v14 = vmax.f32 %v1770_v34, 0.0  ;;  %v1774_v44 = vpop.f32.mrb[15].mxu0  ;;  %v4012_v31 = vld [vmem:[#allocation2 + $0x750] ss:$8 sps:$4 sm:$0xff]  }
 0x245   : > { %v2469_v43 = vmax.f32 %v2422_v38, 0.0  ;;  %v2426_v45 = vpop.f32.mrb[15].mxu1  ;;  %v1818_v46 = vmax.f32 %v1772_v36, 0.0  ;;  %v4020_v33 = vld [vmem:[#allocation2 + $0x764] ss:$8 sps:$4 sm:$0xff]  }
 0x246   : > { %v2470_v47 = vmax.f32 %v2424_v39, 0.0  ;;  %v1821_v57 = vpack.c.bf16 %v1817_v14, %v1817_v14  ;;  %v4015_v34 = vld [vmem:[#allocation2 + $0x560] ss:$8 sps:$4 sm:$0xff]   ;;  %v4023_v12 = vld [vmem:[#allocation2 + $0x574] ss:$8 sps:$4 sm:$0xff]  }
 0x247   : > { %v1822_v49 = vpack.c.bf16 %v1818_v46, %v1818_v46  ;;  %v2473_v58 = vpack.c.bf16 %v2469_v43, %v2469_v43  ;;  %v4018_v38 = vld [vmem:[#allocation2 + $0x760] ss:$8 sps:$4 sm:$0xff]   ;;  %v4026_v35 = vld [vmem:[#allocation2 + $0x774] ss:$8 sps:$4 sm:$0xff]   ;;  %v4021_v36 = vld [vmem:[#allocation2 + $0x570] ss:$8 sps:$4 sm:$0xff]  }
 0x248   : > { %v2474_v50 = vpack.c.bf16 %v2470_v47, %v2470_v47  ;;  %v4024_v39 = vld [vmem:[#allocation2 + $0x770] ss:$8 sps:$4 sm:$0xff]   ;;  %v4029_v41 = vld [vmem:[#allocation2 + $0x584] ss:$8 sps:$4 sm:$0xff]   ;;  %v4027_v14 = vld [vmem:[#allocation2 + $0x580] ss:$8 sps:$4 sm:$0xff]  }
 0x249   : > { %2255 = vmatprep.mubr.bf16.mxu0 %v1822_v49  ;;  %v4625_v61 = vpop.f32.mrb[16].mxu0  ;;  %v4032_v42 = vld [vmem:[#allocation2 + $0x784] ss:$8 sps:$4 sm:$0xff]   ;;  %v4030_v43 = vld [vmem:[#allocation2 + $0x780] ss:$8 sps:$4 sm:$0xff]  }
 0x24a   : > { %2907 = vmatprep.mubr.bf16.mxu1 %v2474_v50  ;;  %v2462_v62 = vpop.f32.mrb[16].mxu1  ;;  %2256 = vmatmul.mubr.bf16.vlgmr.msra.gmra.mrb[20].mxu0 %v1821_v57  ;;  %v1812_v1 = vpop.f32.mrb[17].mxu0  ;;  %v4035_v44 = vld [vmem:[#allocation2 + $0x594] ss:$8 sps:$4 sm:$0xff]   ;;  %v4033_v46 = vld [vmem:[#allocation2 + $0x590] ss:$8 sps:$4 sm:$0xff]  }
 0x24b   : > { %2908 = vmatmul.mubr.bf16.vlgmr.msra.gmra.mrb[20].mxu1 %v2473_v58  ;;  %v4627_v63 = vadd.f32 %v2462_v62, %v2330_v48  ;;  %v2464_v2 = vpop.f32.mrb[17].mxu1  ;;  %2265 = vmatpush1.bf16.msra.mxu0 %v3979_v52  ;;  %v1813_v56 = vadd.f32 %v1812_v1, %v1682_v54  ;;  %v1814_v6 = vpop.f32.mrb[18].mxu0  ;;  %v4038_v45 = vld [vmem:[#allocation2 + $0x794] ss:$8 sps:$4 sm:$0xff]   ;;  %v4036_v47 = vld [vmem:[#allocation2 + $0x790] ss:$8 sps:$4 sm:$0xff]  }
 0x24c   : > { %2917 = vmatpush1.bf16.msra.mxu1 %v3982_v53  ;;  %v2465_v5 = vadd.f32 %v2464_v2, %v2334_v55  ;;  %v2466_v7 = vpop.f32.mrb[18].mxu1  ;;  %2266 = vmatprep.subr.bf16.mxu0 %v3987_v59  ;;  %v1815_v9 = vpop.f32.mrb[19].mxu0  ;;  %v4041_v48 = vld [vmem:[#allocation2 + $0x5a4] ss:$8 sps:$4 sm:$0xff]   ;;  %v4039_v50 = vld [vmem:[#allocation2 + $0x5a0] ss:$8 sps:$4 sm:$0xff]  }
 0x24d   : > { %2918 = vmatprep.subr.bf16.mxu1 %v3990_v60  ;;  %v2467_v10 = vpop.f32.mrb[19].mxu1  ;;  %v1820_v11 = vmax.f32 %v1813_v56, 0.0  ;;  %v4044_v49 = vld [vmem:[#allocation2 + $0x7a4] ss:$8 sps:$4 sm:$0xff]   ;;  %v4042_v52 = vld [vmem:[#allocation2 + $0x7a0] ss:$8 sps:$4 sm:$0xff]   ;;  %v1678_v56 = vrot.slane %v4600_v24, %v4497_v51 }
 0x24e   : > { %v2472_v13 = vmax.f32 %v2465_v5, 0.0  ;;  %v4047_v53 = vld [vmem:[#allocation2 + $0x5b4] ss:$8 sps:$4 sm:$0xff]   ;;  %v4045_v55 = vld [vmem:[#allocation2 + $0x5b0] ss:$8 sps:$4 sm:$0xff]   ;;  %v2471_v24 = vmax.f32 %v4627_v63, 0.0 }
 0x24f   : > { %2267 = vmatpush1.bf16.msra.mxu0 %v3985_v3  ;;  %v1824_v19 = vpack.c.bf16 %v1820_v11, %v1820_v11  ;;  %v4050_v54 = vld [vmem:[#allocation2 + $0x7b4] ss:$8 sps:$4 sm:$0xff]   ;;  %v4048_v57 = vld [vmem:[#allocation2 + $0x7b0] ss:$8 sps:$4 sm:$0xff]   ;;  %v4053_v58 = vld [vmem:[#allocation2 + $0x5c4] ss:$8 sps:$4 sm:$0xff]  }
 0x250   : > { %2919 = vmatpush1.bf16.msra.mxu1 %v3988_v4  ;;  %v2476_v17 = vpack.c.bf16 %v2472_v13, %v2472_v13  ;;  %2268 = vmatprep.subr.bf16.mxu0 %v3993_v8  ;;  %v4056_v59 = vld [vmem:[#allocation2 + $0x7c4] ss:$8 sps:$4 sm:$0xff]   ;;  %v4051_v60 = vld [vmem:[#allocation2 + $0x5c0] ss:$8 sps:$4 sm:$0xff]   ;;  %v4059_v1 = vld [vmem:[#allocation2 + $0x5d4] ss:$8 sps:$4 sm:$0xff]  }
 0x251   : > { %2920 = vmatprep.subr.bf16.mxu1 %v3996_v0  ;;  %2296 = vmatprep.mubr.bf16.mxu0 %v1824_v19  ;;  %v4054_v62 = vld [vmem:[#allocation2 + $0x7c0] ss:$8 sps:$4 sm:$0xff]   ;;  %v4062_v2 = vld [vmem:[#allocation2 + $0x7d4] ss:$8 sps:$4 sm:$0xff]   ;;  %v4057_v3 = vld [vmem:[#allocation2 + $0x5d0] ss:$8 sps:$4 sm:$0xff]   ;;  %v1811_v0 = vadd.f32 %v4625_v61, %v1678_v56 }
 0x252   : > { %2948 = vmatprep.mubr.bf16.mxu1 %v2476_v17  ;;  %v4060_v4 = vld [vmem:[#allocation2 + $0x7d0] ss:$8 sps:$4 sm:$0xff]   ;;  %v4065_v5 = vld [vmem:[#allocation2 + $0x5e4] ss:$8 sps:$4 sm:$0xff]   ;;  %v4063_v7 = vld [vmem:[#allocation2 + $0x5e0] ss:$8 sps:$4 sm:$0xff]  }
 0x253   : > { %2269 = vmatpush1.bf16.msra.mxu0 %v3991_v15  ;;  %v4068_v6 = vld [vmem:[#allocation2 + $0x7e4] ss:$8 sps:$4 sm:$0xff]   ;;  %v4066_v8 = vld [vmem:[#allocation2 + $0x7e0] ss:$8 sps:$4 sm:$0xff]   ;;  %v4071_v9 = vld [vmem:[#allocation2 + $0x5f4] ss:$8 sps:$4 sm:$0xff]   ;;  %v2475_v15 = vpack.c.bf16 %v2471_v24, %v2471_v24 }
 0x254   : > { %2921 = vmatpush1.bf16.msra.mxu1 %v3994_v16  ;;  %2270 = vmatprep.subr.bf16.mxu0 %v3999_v18  ;;  %v4074_v10 = vld [vmem:[#allocation2 + $0x7f4] ss:$8 sps:$4 sm:$0xff]   ;;  %v4069_v11 = vld [vmem:[#allocation2 + $0x5f0] ss:$8 sps:$4 sm:$0xff]   ;;  %v1819_v51 = vmax.f32 %v1811_v0, 0.0 }
 0x255   : > { %2922 = vmatprep.subr.bf16.mxu1 %v4002_v20  ;;  %v4072_v13 = vld [vmem:[#allocation2 + $0x7f0] ss:$8 sps:$4 sm:$0xff]  }
 0x256   : > { %v1823_v61 = vpack.c.bf16 %v1819_v51, %v1819_v51 }
 0x257   : > { %2271 = vmatpush1.bf16.msra.mxu0 %v3997_v21 }
 0x258   : > { %2923 = vmatpush1.bf16.msra.mxu1 %v4000_v22  ;;  %2272 = vmatprep.subr.bf16.mxu0 %v4005_v23 }
 0x259   : > { %2924 = vmatprep.subr.bf16.mxu1 %v4008_v25 }
 0x25b   : > { %2273 = vmatpush1.bf16.msra.mxu0 %v4003_v26 }
 0x25c   : > { %2925 = vmatpush1.bf16.msra.mxu1 %v4006_v27  ;;  %2274 = vmatprep.subr.bf16.mxu0 %v4011_v28 }
 0x25d   : > { %2926 = vmatprep.subr.bf16.mxu1 %v4014_v29 }
 0x25f   : > { %2275 = vmatpush1.bf16.msra.mxu0 %v4009_v30 }
 0x260   : > { %2927 = vmatpush1.bf16.msra.mxu1 %v4012_v31  ;;  %2276 = vmatprep.subr.bf16.mxu0 %v4017_v32 }
 0x261   : > { %2928 = vmatprep.subr.bf16.mxu1 %v4020_v33 }
 0x263   : > { %2277 = vmatpush1.bf16.msra.mxu0 %v4015_v34 }
 0x264   : > { %2929 = vmatpush1.bf16.msra.mxu1 %v4018_v38  ;;  %2278 = vmatprep.subr.bf16.mxu0 %v4023_v12 }
 0x265   : > { %2930 = vmatprep.subr.bf16.mxu1 %v4026_v35 }
 0x267   : > { %2279 = vmatpush1.bf16.msra.mxu0 %v4021_v36 }
 0x268   : > { %2931 = vmatpush1.bf16.msra.mxu1 %v4024_v39  ;;  %2280 = vmatprep.subr.bf16.mxu0 %v4029_v41 }
 0x269   : > { %2932 = vmatprep.subr.bf16.mxu1 %v4032_v42 }
 0x26b   : > { %2281 = vmatpush1.bf16.msra.mxu0 %v4027_v14 }
 0x26c   : > { %2933 = vmatpush1.bf16.msra.mxu1 %v4030_v43  ;;  %2282 = vmatprep.subr.bf16.mxu0 %v4035_v44 }
 0x26d   : > { %2934 = vmatprep.subr.bf16.mxu1 %v4038_v45 }
 0x26f   : > { %2283 = vmatpush1.bf16.msra.mxu0 %v4033_v46 }
 0x270   : > { %2935 = vmatpush1.bf16.msra.mxu1 %v4036_v47  ;;  %2284 = vmatprep.subr.bf16.mxu0 %v4041_v48 }
 0x271   : > { %2936 = vmatprep.subr.bf16.mxu1 %v4044_v49 }
 0x273   : > { %2285 = vmatpush1.bf16.msra.mxu0 %v4039_v50 }
 0x274   : > { %2937 = vmatpush1.bf16.msra.mxu1 %v4042_v52  ;;  %2286 = vmatprep.subr.bf16.mxu0 %v4047_v53 }
 0x275   : > { %2938 = vmatprep.subr.bf16.mxu1 %v4050_v54 }
 0x277   : > { %2287 = vmatpush1.bf16.msra.mxu0 %v4045_v55 }
 0x278   : > { %2939 = vmatpush1.bf16.msra.mxu1 %v4048_v57  ;;  %2288 = vmatprep.subr.bf16.mxu0 %v4053_v58 }
 0x279   : > { %2940 = vmatprep.subr.bf16.mxu1 %v4056_v59 }
 0x27b   : > { %2289 = vmatpush1.bf16.msra.mxu0 %v4051_v60 }
 0x27c   : > { %2941 = vmatpush1.bf16.msra.mxu1 %v4054_v62  ;;  %2290 = vmatprep.subr.bf16.mxu0 %v4059_v1 }
 0x27d   : > { %2942 = vmatprep.subr.bf16.mxu1 %v4062_v2 }
 0x27f   : > { %2291 = vmatpush1.bf16.msra.mxu0 %v4057_v3 }
 0x280   : > { %2943 = vmatpush1.bf16.msra.mxu1 %v4060_v4  ;;  %2292 = vmatprep.subr.bf16.mxu0 %v4065_v5 }
 0x281   : > { %2944 = vmatprep.subr.bf16.mxu1 %v4068_v6 }
 0x283   : > { %2293 = vmatpush1.bf16.msra.mxu0 %v4063_v7 }
 0x284   : > { %2945 = vmatpush1.bf16.msra.mxu1 %v4066_v8  ;;  %2294 = vmatprep.subr.bf16.mxu0 %v4071_v9 }
 0x285   : > { %2946 = vmatprep.subr.bf16.mxu1 %v4074_v10 }
 0x287   : > { %2295 = vmatpush1.bf16.msra.mxu0 %v4069_v11 }
 0x288   : > { %2947 = vmatpush1.bf16.msra.mxu1 %v4072_v13 }
 0x28a   : > { %2297 = vmatmul.mubr.bf16.vlgmr.msra.gmra.mrb[20].mxu0 %v1823_v61 }
 0x28b   : > { %2949 = vmatmul.mubr.bf16.vlgmr.msra.gmra.mrb[20].mxu1 %v2475_v15 }
 0x28c   : > { %4116 = shalt.err (!%p4113_p7)
}
 0x28d   : > { %s4117_s20 = scalar_lea.hbm %s4641_s13, 256  ;;  %s4121_s10 = scalar_lea.hbm %s4786_s6, 512 }
 0x28e   : > { %p4118_p8 = scmp.ne.s32.totalorder %s4641_s13, %s4117_s20  ;;  %p4122_p1 = scmp.lt.u32.totalorder %s4641_s13, %s4786_s6 }
 0x28f   : > { %p4123_p0 = scmp.lt.u32.totalorder %s4121_s10, %s4117_s20  ;;  %p4125_p6 = scmp.lt.u32.totalorder %s4117_s20, %s4641_s13 }
 0x290   : > { %p4119_p11 = pnand %p4118_p8, %p4804_p9 }
 0x291   : > { %p4124_p5 = por %p4123_p0, %p4122_p1 }
 0x292   : > { %p4120_p13 = pneg %p4119_p11 }
 0x293   : > { %p4126_p10 = por %p4125_p6, %p4124_p5 }
 0x295   : > { %p4127_p12 = pnand %p4126_p10, %p4120_p13 }
 0x297   : > { %4130 = shalt.err (!%p4127_p12)
}
 0x298   : > { %3579 = dma.vmem_to_hbm [thread:$0]  (%p4804_p9), %s3004_s21, 256, %s4641_s13, %s4644_s22  }
 0x299   : > { %s4668_s23 = scalar_lea.hbm %s4785_s5, %s4635_s25  ;;  %s2989_s19 = sshll.u32 %s4606_s18, 4  ;;  %s2990_s19 = int_to_ptr.vmem [resolvable:$true] %s2989_s19 }
 0x29a   : > { %s2960_s20 = scalar_lea.sflag [#allocation4], %s4582_s17  ;;  %s4131_s10 = scalar_lea.vmem %s2990_s19, 256 }
 0x29b   : > { %p4132_p2 = scmp.ne.s32.totalorder %s2990_s19, %s4131_s10  ;;  %s4269_s26 = smov [#allocation5]  }
 0x29c   : > { %s4135_s0 = sshll.u32 %s4269_s26, 4  ;;  %s4136_s0 = int_to_ptr.vmem [resolvable:$false] %s4135_s0 }
 0x29d   : > { %p4133_p3 = pnand %p4132_p2, %p4804_p9  ;;  %s4137_s1 = scalar_lea.vmem %s4136_s0, 512 }
 0x29e   : > { %p4138_p7 = scmp.lt.s32.totalorder %s2990_s19, %s4136_s0  ;;  %p4139_p8 = scmp.lt.s32.totalorder %s4137_s1, %s4131_s10 }
 0x29f   : > { %p4134_p4 = pneg %p4133_p3 }
 0x2a0   : > { %p4140_p11 = por %p4139_p8, %p4138_p7 }
 0x2a2   : > { %p4141_p13 = pnand %p4140_p11, %p4134_p4 }
 0x2a4   : > { %4144 = shalt.err (!%p4141_p13)
}
 0x2a5   : > { %s4145_s18 = scalar_lea.hbm %s4668_s23, 256  ;;  %s4149_s24 = scalar_lea.hbm %s4785_s5, 512 }
 0x2a6   : > { %p4146_p1 = scmp.ne.s32.totalorder %s4668_s23, %s4145_s18  ;;  %p4150_p6 = scmp.lt.u32.totalorder %s4668_s23, %s4785_s5 }
 0x2a7   : > { %p4151_p10 = scmp.lt.u32.totalorder %s4149_s24, %s4145_s18  ;;  %p4153_p2 = scmp.lt.u32.totalorder %s4145_s18, %s4668_s23 }
 0x2a8   : > { %p4147_p0 = pnand %p4146_p1, %p4804_p9 }
 0x2a9   : > { %p4152_p12 = por %p4151_p10, %p4150_p6 }
 0x2aa   : > { %p4148_p5 = pneg %p4147_p0 }
 0x2ab   : > { %p4154_p3 = por %p4153_p2, %p4152_p12 }
 0x2ad   : > { %p4155_p4 = pnand %p4154_p3, %p4148_p5 }
 0x2af   : > { %4158 = shalt.err (!%p4155_p4)
}
 0x2b0   : > { %3578 = dma.vmem_to_hbm [thread:$0]  (%p4804_p9), %s2990_s19, 256, %s4668_s23, %s2960_s20   ;;  %v3383_v63 = vld [vmem:[%s4784_s4 + $0x4] sm:$0x3]  ;;  %v3467_v16 = vld [vmem:[%s4784_s4 + $0x6] sm:$0x3] }
 0x2b1   : > { %v1896_v19 = vrot.slane %v3383_v63, %v4479_v37  ;;  %v2548_v17 = vrot.slane %v3467_v16, %v4479_v37  ;;  %s332_s18 = scalar_lea.vmem [#allocation8], %s4591_s12  ;;  %v1900_v18 = vrot.slane %v3383_v63, %v4489_v40  ;;  %v2552_v20 = vrot.slane %v3467_v16, %v4489_v40  ;;  %s339_s23 = scalar_lea.vmem [#allocation9], %s4591_s12 }
 0x2b2   : > { %s3017_s21 = sshll.u32 %s332_s18, 4  ;;  %s3031_s19 = sshll.u32 %s339_s23, 4  ;;  %s4701_s21 = int_to_ptr.vmem [resolvable:$true] %s3017_s21  ;;  %s4715_s19 = int_to_ptr.vmem [resolvable:$true] %s3031_s19 }
 0x2b3   : > { %s4707_s9 = scalar_lea.hbm %s4787_s7, %s4635_s25  ;;  %s4713_s1 = scalar_lea.hbm %s4788_s8, %s4635_s25 }
 0x2b4   : > { %s4159_s10 = scalar_lea.vmem %s4701_s21, 256  ;;  %s4270_s0 = smov [#allocation8]  }
 0x2b5   : > { %p4160_p7 = scmp.ne.s32.totalorder %s4701_s21, %s4159_s10  ;;  %s4163_s13 = sshll.u32 %s4270_s0, 4  ;;  %s4164_s13 = int_to_ptr.vmem [resolvable:$false] %s4163_s13 }
 0x2b6   : > { %s4165_s20 = scalar_lea.vmem %s4164_s13, 512  ;;  %p4166_p13 = scmp.lt.s32.totalorder %s4701_s21, %s4164_s13 }
 0x2b7   : > { %p4161_p8 = pnand %p4160_p7, %p4804_p9  ;;  %p4167_p1 = scmp.lt.s32.totalorder %s4165_s20, %s4159_s10 }
 0x2b9   : > { %p4162_p11 = pneg %p4161_p8  ;;  %p4168_p0 = por %p4167_p1, %p4166_p13 }
 0x2bb   : > { %p4169_p5 = pnand %p4168_p0, %p4162_p11 }
 0x35d   : > { %v2298_v21 = vpop.f32.mrb[20].mxu0 }
 0x35e   : > { %v2950_v22 = vpop.f32.mrb[20].mxu1  ;;  %v3554_v23 = vadd.f32 %v2298_v21, %v1896_v19  ;;  %v2300_v26 = vpop.f32.mrb[21].mxu0 }
 0x35f   : > { %v3556_v25 = vadd.f32 %v2950_v22, %v2548_v17  ;;  %v2952_v37 = vpop.f32.mrb[21].mxu1  ;;  %v3555_v27 = vadd.f32 %v2300_v26, %v1900_v18  ;;  %v2302_v29 = vpop.f32.mrb[22].mxu0 }
 0x360   : > { %v3557_v28 = vadd.f32 %v2952_v37, %v2552_v20  ;;  %v2954_v30 = vpop.f32.mrb[22].mxu1  ;;  %2305 = vst [vmem:[%s332_s18] sm:$0xff] %v3554_v23  ;;  %v2303_v40 = vpop.f32.mrb[23].mxu0 }
 0x361   : > { %2957 = vst [vmem:[%s339_s23] sm:$0xff] %v3556_v25  ;;  %v2955_v31 = vpop.f32.mrb[23].mxu1  ;;  %2306 = vst [vmem:[%s332_s18 + $0x8] sm:$0xff] %v3555_v27 }
 0x362   : > { %2958 = vst [vmem:[%s339_s23 + $0x8] sm:$0xff] %v3557_v28 }
 0x363   : > { %4172 = shalt.err (!%p4169_p5)
}
 0x364   : > { %s4173_s25 = scalar_lea.hbm %s4707_s9, 256  ;;  %s4177_s24 = scalar_lea.hbm %s4787_s7, 512 }
 0x365   : > { %p4174_p6 = scmp.ne.s32.totalorder %s4707_s9, %s4173_s25  ;;  %p4178_p2 = scmp.lt.u32.totalorder %s4707_s9, %s4787_s7 }
 0x366   : > { %p4179_p3 = scmp.lt.u32.totalorder %s4177_s24, %s4173_s25  ;;  %p4181_p7 = scmp.lt.u32.totalorder %s4173_s25, %s4707_s9 }
 0x367   : > { %p4175_p10 = pnand %p4174_p6, %p4804_p9 }
 0x368   : > { %p4180_p4 = por %p4179_p3, %p4178_p2 }
 0x369   : > { %p4176_p12 = pneg %p4175_p10 }
 0x36a   : > { %p4182_p8 = por %p4181_p7, %p4180_p4 }
 0x36c   : > { %p4183_p11 = pnand %p4182_p8, %p4176_p12 }
 0x36e   : > { %4186 = shalt.err (!%p4183_p11)
}
 0x36f   : > { %3580 = dma.vmem_to_hbm [thread:$0]  (%p4804_p9), %s4701_s21, 256, %s4707_s9, %s4644_s22  }
 0x370   : > { %s2975_s10 = scalar_lea.sflag [#allocation10], %s4582_s17  ;;  %s4187_s0 = scalar_lea.vmem %s4715_s19, 256 }
 0x371   : > { %p4188_p13 = scmp.ne.s32.totalorder %s4715_s19, %s4187_s0  ;;  %s4271_s13 = smov [#allocation9]  }
 0x372   : > { %s4191_s20 = sshll.u32 %s4271_s13, 4  ;;  %s4192_s20 = int_to_ptr.vmem [resolvable:$false] %s4191_s20 }
 0x373   : > { %p4189_p1 = pnand %p4188_p13, %p4804_p9  ;;  %s4193_s25 = scalar_lea.vmem %s4192_s20, 512 }
 0x374   : > { %p4194_p5 = scmp.lt.s32.totalorder %s4715_s19, %s4192_s20  ;;  %p4195_p6 = scmp.lt.s32.totalorder %s4193_s25, %s4187_s0 }
 0x375   : > { %p4190_p0 = pneg %p4189_p1 }
 0x376   : > { %p4196_p10 = por %p4195_p6, %p4194_p5 }
 0x378   : > { %p4197_p12 = pnand %p4196_p10, %p4190_p0 }
 0x37a   : > { %4200 = shalt.err (!%p4197_p12)
}
 0x37b   : > { %s4201_s17 = scalar_lea.hbm %s4713_s1, 256  ;;  %s4205_s9 = scalar_lea.hbm %s4788_s8, 512 }
 0x37c   : > { %p4202_p2 = scmp.ne.s32.totalorder %s4713_s1, %s4201_s17  ;;  %p4206_p7 = scmp.lt.u32.totalorder %s4713_s1, %s4788_s8 }
 0x37d   : > { %p4207_p8 = scmp.lt.u32.totalorder %s4205_s9, %s4201_s17  ;;  %p4209_p13 = scmp.lt.u32.totalorder %s4201_s17, %s4713_s1 }
 0x37e   : > { %p4203_p3 = pnand %p4202_p2, %p4804_p9 }
 0x37f   : > { %p4208_p11 = por %p4207_p8, %p4206_p7 }
 0x380   : > { %p4204_p4 = pneg %p4203_p3 }
 0x381   : > { %p4210_p1 = por %p4209_p13, %p4208_p11 }
 0x383   : > { %p4211_p0 = pnand %p4210_p1, %p4204_p4 }
 0x385   : > { %4214 = shalt.err (!%p4211_p0)
}
 0x386   : > { %3581 = dma.vmem_to_hbm [thread:$0]  (%p4804_p9), %s4715_s19, 256, %s4713_s1, %s2975_s10  }
 0x387 PF: > { %p3605_p5 = scmp.ge.s32.totalorder %s4261_s30, 2  ;;  %s3043_s24 = sand.u32 1, %s4249_s27  }
 0x388   : > { %p4805_p6 = scmp.ne.s32.totalorder %s4796_s16, 0  ;;  %s3044_s12 = scalar_lea.sflag [#allocation4], %s3043_s24 }
 0x38a   : > { %p3591_p10 = pnand %p3605_p5, %p4805_p6 }
 0x38c   : > { %4236 = dma.done.wait (!%p3591_p10), %s3044_s12, 256  }
 0x38d   : > { %4238 = vsyncadd (!%p3591_p10), %s3044_s12, 4294967040  ;;  %s4806_s26 = sadd.s32 4294967294, %s4261_s30  }
 0x38e   : > { %s3052_s0 = sand.u32 1, %s4806_s26  }
 0x38f   : > { %s3053_s13 = scalar_lea.sflag [#allocation7], %s3052_s0 }
 0x390   : > { %4240 = dma.done.wait (!%p3591_p10), %s3053_s13, 512  }
 0x391   : > { %4242 = vsyncadd (!%p3591_p10), %s3053_s13, 4294966784  ;;  %s3071_s15 = scalar_lea.sflag [#allocation10], %s3043_s24 }
 0x392   : > { %4244 = dma.done.wait (!%p3591_p10), %s3071_s15, 256  }
 0x393   : > { %4246 = vsyncadd (!%p3591_p10), %s3071_s15, 4294967040  ;;  %p26_p9 = scmp.ge.s32.totalorder %s4342_s11, 4   ;;  %s4807_s27 = smov %s4253_s28 }
 0x394   : > { %s4808_s28 = smov %s4257_s29  ;;  %s4809_s29 = smov %s4355_s14 }
 0x395   : > { %s4810_s30 = smov %s4342_s11  ;;  %28 = sbr.rel (!%p26_p9) target bundleno = 11 (0xb), region = 141 }
 0x39c   :  { %3076 = vsyncpa [#allocation3], 1 }
 0x39d   :  { %3078 = vsyncpa [#allocation3 + $0x1], 1 }
 0x39e   :  { %3079 = vsyncpa [#allocation4], 1 }
 0x39f   :  { %3081 = vsyncpa [#allocation4 + $0x1], 1 }
 0x3a0   :  { %3082 = vsyncpa [#allocation7], 1 }
 0x3a1   :  { %3084 = vsyncpa [#allocation7 + $0x1], 1 }
 0x3a2   :  { %3085 = vsyncpa [#allocation10], 1 }
 0x3a3   :  { %3087 = vsyncpa [#allocation10 + $0x1], 1 }

</bundles_post_ra>
